<compile_context>
chip_gen: v7x
topology: tpu7x:2x2x1
jax: 0.10.0
libtpu: 0.0.40
codegen_flags: <defaults>
</compile_context>

<pallas_src>
import functools

import jax
import jax.numpy as jnp
from jax.experimental import pallas as pl
from jax.experimental.pallas import tpu as pltpu

_EPS = 1e-5
_VMEM_LIMIT = 48 * 1024 * 1024  # explicit scoped-VMEM budget (fits v5e/v6e/v7x)


# --------------------------------------------------------------------------- #
# Fused [maxpool2x2?] -> [prev-layer BN+ReLU?] -> conv3x3 -> per-tile BN stats #
# --------------------------------------------------------------------------- #
def _conv_bn_stats_kernel(x_ref, isc_ref, ish_ref, w_ref,
                          o_ref, sum_ref, sq_ref, xpad_ref,
                          *, do_pool, apply_in, use_im2col):
    # x_ref   : (1, Hx, Wx, Cin)  input block (Hx=2H, Wx=2W when do_pool)
    # isc_ref : (1, Cin)  folded BN scale of previous layer (unused if !apply_in)
    # ish_ref : (1, Cin)  folded BN shift of previous layer
    # w_ref   : (9*Cin, TC) if use_im2col else (9, Cin, TC)
    # o_ref   : (1, H, W, TC)   raw conv output (pre-BN)
    # sum_ref : (1, 1, TC)      per-sample per-channel sum of conv output
    # sq_ref  : (1, 1, TC)      per-sample per-channel sum of squares
    # xpad_ref: (1, H+2, W+2, Cin) VMEM scratch, zero border = conv padding
    _, H, W, TC = o_ref.shape
    Cin = xpad_ref.shape[-1]

    # ---- stage the input tile (pool for layer 0, BN+ReLU fold for later layers)
    if do_pool:
        a = x_ref[:, pl.ds(0, H, 2), pl.ds(0, W, 2), :]
        b = x_ref[:, pl.ds(0, H, 2), pl.ds(1, W, 2), :]
        c = x_ref[:, pl.ds(1, H, 2), pl.ds(0, W, 2), :]
        d = x_ref[:, pl.ds(1, H, 2), pl.ds(1, W, 2), :]
        xin = jnp.maximum(jnp.maximum(a, b), jnp.maximum(c, d)).astype(jnp.float32)
    else:
        xin = x_ref[...].astype(jnp.float32)
    if apply_in:
        # previous layer's BatchNorm folded into scale/shift, then ReLU
        xin = jnp.maximum(xin * isc_ref[...] + ish_ref[...], 0.0)

    # ---- zero-bordered padded copy in VMEM (replaces host-side jnp.pad).
    # Re-zeroed each grid step: cheap single vectorized memset and keeps the
    # scratch valid even if grid axes are sharded across cores.
    xpad_ref[...] = jnp.zeros_like(xpad_ref)
    xpad_ref[:, pl.ds(1, H), pl.ds(1, W), :] = xin.astype(xpad_ref.dtype)

    # ---- 3x3 convolution on the MXU (f32 accumulation)
    if use_im2col:
        # small Cin: single matmul with K = 9*Cin
        cols = [xpad_ref[:, pl.ds(ky, H), pl.ds(kx, W), :]
                for ky in range(3) for kx in range(3)]
        patch = jnp.concatenate(cols, axis=-1).reshape(H * W, 9 * Cin)
        acc = jnp.dot(patch, w_ref[...], preferred_element_type=jnp.float32)
    else:
        # large Cin: 9 taps, each a full-K matmul
        acc = jnp.zeros((H * W, TC), jnp.float32)
        for ky in range(3):
            for kx in range(3):
                p = xpad_ref[:, pl.ds(ky, H), pl.ds(kx, W), :].reshape(H * W, Cin)
                acc = acc + jnp.dot(p, w_ref[3 * ky + kx],
                                    preferred_element_type=jnp.float32)

    # NOTE: conv bias is intentionally omitted — it is exactly cancelled by the
    # training-mode BatchNorm mean subtraction.
    o_ref[...] = acc.reshape(1, H, W, TC).astype(o_ref.dtype)
    sum_ref[...] = jnp.sum(acc, axis=0, keepdims=True).reshape(1, 1, TC)
    sq_ref[...] = jnp.sum(acc * acc, axis=0, keepdims=True).reshape(1, 1, TC)


def _cout_tile(cout):
    if cout % 256 == 0:
        return 256
    if cout % 128 == 0:
        return 128
    return cout


def conv_layer(x_nhwc, in_scale, in_shift, w_hwio, *, do_pool, apply_in,
               matmul_dtype):
    """Returns (raw conv output (N,H,W,Cout), per-sample sum, per-sample sumsq)."""
    N, Hx, Wx, Cin = x_nhwc.shape
    Cout = w_hwio.shape[3]
    H, W = (Hx // 2, Wx // 2) if do_pool else (Hx, Wx)

    TC = _cout_tile(Cout)
    n_ct = Cout // TC

    use_im2col = Cin <= 32
    if use_im2col:
        wk = w_hwio.reshape(9 * Cin, Cout).astype(matmul_dtype)
        w_spec = pl.BlockSpec((9 * Cin, TC), lambda n, c: (0, c))
    else:
        wk = w_hwio.reshape(9, Cin, Cout).astype(matmul_dtype)
        w_spec = pl.BlockSpec((9, Cin, TC), lambda n, c: (0, 0, c))

    if in_scale is None:  # first layer: no previous BN to fold
        in_scale = jnp.ones((Cin,), jnp.float32)
        in_shift = jnp.zeros((Cin,), jnp.float32)

    kernel = functools.partial(_conv_bn_stats_kernel, do_pool=do_pool,
                               apply_in=apply_in, use_im2col=use_im2col)

    out_shape = (jax.ShapeDtypeStruct((N, H, W, Cout), matmul_dtype),
                 jax.ShapeDtypeStruct((N, 1, Cout), jnp.float32),
                 jax.ShapeDtypeStruct((N, 1, Cout), jnp.float32))

    grid_spec = pltpu.PrefetchScalarGridSpec(
        num_scalar_prefetch=0,
        grid=(N, n_ct),
        in_specs=[pl.BlockSpec((1, Hx, Wx, Cin), lambda n, c: (n, 0, 0, 0)),
                  pl.BlockSpec((1, Cin), lambda n, c: (0, 0)),
                  pl.BlockSpec((1, Cin), lambda n, c: (0, 0)),
                  w_spec],
        out_specs=(pl.BlockSpec((1, H, W, TC), lambda n, c: (n, 0, 0, c)),
                   pl.BlockSpec((1, 1, TC), lambda n, c: (n, 0, c)),
                   pl.BlockSpec((1, 1, TC), lambda n, c: (n, 0, c))),
        scratch_shapes=[pltpu.VMEM((1, H + 2, W + 2, Cin), matmul_dtype)],
    )

    return pl.pallas_call(
        kernel,
        out_shape=out_shape,
        grid_spec=grid_spec,
        compiler_params=pltpu.CompilerParams(
            dimension_semantics=("parallel", "parallel"),
            vmem_limit_bytes=_VMEM_LIMIT),
    )(x_nhwc,
      in_scale.reshape(1, Cin).astype(jnp.float32),
      in_shift.reshape(1, Cin).astype(jnp.float32),
      wk)


# --------------------------------------------------------------------------- #
# Standalone BN (folded scale/shift) + ReLU apply — used for the last layer    #
# --------------------------------------------------------------------------- #
def _bn_relu_kernel(x_ref, sc_ref, sh_ref, o_ref):
    x = x_ref[...].astype(jnp.float32)
    o_ref[...] = jnp.maximum(x * sc_ref[...] + sh_ref[...], 0.0).astype(o_ref.dtype)


def bn_relu_apply(x_nhwc, scale, shift):
    N, H, W, C = x_nhwc.shape
    grid_spec = pltpu.PrefetchScalarGridSpec(
        num_scalar_prefetch=0,
        grid=(N,),
        in_specs=[pl.BlockSpec((1, H, W, C), lambda n: (n, 0, 0, 0)),
                  pl.BlockSpec((1, C), lambda n: (0, 0)),
                  pl.BlockSpec((1, C), lambda n: (0, 0))],
        out_specs=pl.BlockSpec((1, H, W, C), lambda n: (n, 0, 0, 0)),
    )
    return pl.pallas_call(
        _bn_relu_kernel,
        out_shape=jax.ShapeDtypeStruct((N, H, W, C), jnp.float32),
        grid_spec=grid_spec,
        compiler_params=pltpu.CompilerParams(
            dimension_semantics=("parallel",),
            vmem_limit_bytes=_VMEM_LIMIT),
    )(x_nhwc,
      scale.reshape(1, C).astype(jnp.float32),
      shift.reshape(1, C).astype(jnp.float32))


# --------------------------------------------------------------------------- #
# DownBlock                                                                    #
# --------------------------------------------------------------------------- #
def init_downblock_params(key, in_channels, out_channels, nb_conv):
    params = []
    cin = in_channels
    for _ in range(nb_conv):
        kw, kb, key = jax.random.split(key, 3)
        w = 0.1 * jax.random.normal(kw, (3, 3, cin, out_channels), jnp.float32)
        b = 0.1 * jax.random.normal(kb, (out_channels,), jnp.float32)
        gamma = jnp.ones((out_channels,), jnp.float32)
        beta = jnp.zeros((out_channels,), jnp.float32)
        params.append((w, b, gamma, beta))
        cin = out_channels
    return params


def down_block_nhwc(x_nhwc, params, matmul_dtype=jnp.bfloat16):
    """MaxPool2d(2) followed by nb_Conv x (Conv3x3 -> BatchNorm(batch stats) -> ReLU)."""
    x = x_nhwc
    scale = shift = None
    for li, (w, b, gamma, beta) in enumerate(params):
        # `b` (conv bias) is unused on purpose: BN's mean subtraction cancels it.
        del b
        conv, psum, psq = conv_layer(x, scale, shift, w,
                                     do_pool=(li == 0),
                                     apply_in=(li > 0),
                                     matmul_dtype=matmul_dtype)
        # Combine the per-sample partial stats (tiny arrays) -> batch statistics.
        n_el = conv.shape[0] * conv.shape[1] * conv.shape[2]
        mean = jnp.sum(psum, axis=(0, 1)) / n_el
        var = jnp.sum(psq, axis=(0, 1)) / n_el - mean * mean  # biased, like BN
        inv = jax.lax.rsqrt(var + _EPS)
        scale = gamma * inv
        shift = beta - mean * scale
        x = conv
    # Apply the last layer's BatchNorm + ReLU.
    return bn_relu_apply(x, scale, shift)


@functools.partial(jax.jit, static_argnames=("matmul_dtype",))
def down_block(x_nchw, params, matmul_dtype=jnp.bfloat16):
    """PyTorch-parity wrapper: NCHW in / NCHW out.

    In a full model, keep everything NHWC and hoist these two transposes to
    the model entry/exit instead of paying them per block.
    """
    x = jnp.transpose(x_nchw, (0, 2, 3, 1))            # NCHW -> NHWC
    y = down_block_nhwc(x, params, matmul_dtype=matmul_dtype)
    return jnp.transpose(y, (0, 3, 1, 2))               # NHWC -> NCHW


# --------------------------------------------------------------------------- #
# Pure-JAX reference (PyTorch training-mode semantics, including the bias)     #
# --------------------------------------------------------------------------- #
def ref_down_block(x_nchw, params):
    x = jax.lax.reduce_window(x_nchw, -jnp.inf, jax.lax.max,
                              (1, 1, 2, 2), (1, 1, 2, 2), 'VALID')
    for (w, b, g, bt) in params:
        y = jax.lax.conv_general_dilated(
            x, w, window_strides=(1, 1), padding='SAME',
            dimension_numbers=('NCHW', 'HWIO', 'NCHW'))
        y = y + b[None, :, None, None]
        mean = jnp.mean(y, axis=(0, 2, 3), keepdims=True)
        var = jnp.mean((y - mean) ** 2, axis=(0, 2, 3), keepdims=True)
        y = (y - mean) * jax.lax.rsqrt(var + _EPS)
        y = y * g[None, :, None, None] + bt[None, :, None, None]
        x = jnp.maximum(y, 0.0)
    return x


if __name__ == "__main__":
    key = jax.random.PRNGKey(0)
    kx, kp = jax.random.split(key)

    N, C_in, H, W = 2, 4, 16, 16
    C_out, nb_conv = 8, 2

    x = jax.random.normal(kx, (N, C_in, H, W), jnp.float32)
    params = init_downblock_params(kp, C_in, C_out, nb_conv)

    ref = ref_down_block(x, params)

    # Strict check: f32 MXU path.
    out_f32 = jax.block_until_ready(down_block(x, params, matmul_dtype=jnp.float32))
    assert out_f32.shape == (N, C_out, H // 2, W // 2), out_f32.shape
    assert jnp.allclose(out_f32, ref, atol=2e-3, rtol=2e-3), float(
        jnp.max(jnp.abs(out_f32 - ref)))

    # Default perf path: bf16 matmuls + bf16 inter-layer activations,
    # f32 accumulation and f32 BN statistics.
    out_bf16 = jax.block_until_ready(down_block(x, params))
    assert out_bf16.shape == (N, C_out, H // 2, W // 2), out_bf16.shape
    assert jnp.allclose(out_bf16, ref, atol=5e-2, rtol=5e-2), float(
        jnp.max(jnp.abs(out_bf16 - ref)))

    print("KERNEL_OK")
</pallas_src>

<mosaic_0001>
module attributes {stable_mosaic.version = 11 : i64} {
  func.func @_conv_bn_stats_kernel(%arg0: i32, %arg1: i32, %arg2: memref<1x16x16x4xf32, #tpu.memory_space<vmem>>, %arg3: memref<1x4xf32, #tpu.memory_space<vmem>>, %arg4: memref<1x4xf32, #tpu.memory_space<vmem>>, %arg5: memref<36x8xf32, #tpu.memory_space<vmem>>, %arg6: memref<1x8x8x8xf32, #tpu.memory_space<vmem>>, %arg7: memref<1x1x8xf32, #tpu.memory_space<vmem>>, %arg8: memref<1x1x8xf32, #tpu.memory_space<vmem>>, %arg9: memref<1x10x10x4xf32, #tpu.memory_space<vmem>>) attributes {dimension_semantics = [#tpu.dimension_semantics<parallel>, #tpu.dimension_semantics<parallel>], iteration_bounds = array<i64: 2, 1>, scalar_prefetch = 0 : i64, scratch_operands = 1 : i64, tpu.core_type = #tpu.core_type<tc>, window_params = [{transform_indices = @transform_0, window_bounds = array<i64: 1, 16, 16, 4>}, {pipeline_mode = #tpu.pipeline_mode<synchronous>, transform_indices = @transform_1, window_bounds = array<i64: 1, 4>}, {pipeline_mode = #tpu.pipeline_mode<synchronous>, transform_indices = @transform_2, window_bounds = array<i64: 1, 4>}, {transform_indices = @transform_3, window_bounds = array<i64: 36, 8>}, {transform_indices = @transform_4, window_bounds = array<i64: 1, 8, 8, 8>}, {transform_indices = @transform_5, window_bounds = array<i64: 1, 1, 8>}, {transform_indices = @transform_6, window_bounds = array<i64: 1, 1, 8>}]} {
    %c0 = arith.constant 0 : index
    %c0_0 = arith.constant 0 : index
    %c0_1 = arith.constant 0 : index
    %c0_2 = arith.constant 0 : index
    %0 = tpu.strided_load %arg2[%c0, %c0_0, %c0_1, %c0_2] {strides = array<i32: 1, 2, 2, 1>} : memref<1x16x16x4xf32, #tpu.memory_space<vmem>>, vector<1x8x8x4xf32>
    %c0_3 = arith.constant 0 : index
    %c0_4 = arith.constant 0 : index
    %c1 = arith.constant 1 : index
    %c0_5 = arith.constant 0 : index
    %1 = tpu.strided_load %arg2[%c0_3, %c0_4, %c1, %c0_5] {strides = array<i32: 1, 2, 2, 1>} : memref<1x16x16x4xf32, #tpu.memory_space<vmem>>, vector<1x8x8x4xf32>
    %c0_6 = arith.constant 0 : index
    %c1_7 = arith.constant 1 : index
    %c0_8 = arith.constant 0 : index
    %c0_9 = arith.constant 0 : index
    %2 = tpu.strided_load %arg2[%c0_6, %c1_7, %c0_8, %c0_9] {strides = array<i32: 1, 2, 2, 1>} : memref<1x16x16x4xf32, #tpu.memory_space<vmem>>, vector<1x8x8x4xf32>
    %c0_10 = arith.constant 0 : index
    %c1_11 = arith.constant 1 : index
    %c1_12 = arith.constant 1 : index
    %c0_13 = arith.constant 0 : index
    %3 = tpu.strided_load %arg2[%c0_10, %c1_11, %c1_12, %c0_13] {strides = array<i32: 1, 2, 2, 1>} : memref<1x16x16x4xf32, #tpu.memory_space<vmem>>, vector<1x8x8x4xf32>
    %4 = arith.maximumf %0, %1 : vector<1x8x8x4xf32>
    %5 = arith.maximumf %2, %3 : vector<1x8x8x4xf32>
    %6 = arith.maximumf %4, %5 : vector<1x8x8x4xf32>
    %cst = arith.constant 0.000000e+00 : f32
    %7 = vector.broadcast %cst : f32 to vector<1x10x10x4xf32>
    %c0_14 = arith.constant 0 : index
    %c0_15 = arith.constant 0 : index
    %c0_16 = arith.constant 0 : index
    %c0_17 = arith.constant 0 : index
    %8 = vector.load %arg9[%c0_14, %c0_15, %c0_16, %c0_17] : memref<1x10x10x4xf32, #tpu.memory_space<vmem>>, vector<1x10x10x4xf32>
    tpu.vector_store %arg9[%c0_14, %c0_15, %c0_16, %c0_17], %7 {strides = array<i32>} : memref<1x10x10x4xf32, #tpu.memory_space<vmem>>, vector<1x10x10x4xf32>,
    %c0_18 = arith.constant 0 : index
    %c1_19 = arith.constant 1 : index
    %c1_20 = arith.constant 1 : index
    %c0_21 = arith.constant 0 : index
    %9 = vector.load %arg9[%c0_18, %c1_19, %c1_20, %c0_21] : memref<1x10x10x4xf32, #tpu.memory_space<vmem>>, vector<1x8x8x4xf32>
    tpu.vector_store %arg9[%c0_18, %c1_19, %c1_20, %c0_21], %6 {strides = array<i32>} : memref<1x10x10x4xf32, #tpu.memory_space<vmem>>, vector<1x8x8x4xf32>,
    %c0_22 = arith.constant 0 : index
    %c0_23 = arith.constant 0 : index
    %c0_24 = arith.constant 0 : index
    %c0_25 = arith.constant 0 : index
    %10 = vector.load %arg9[%c0_22, %c0_23, %c0_24, %c0_25] : memref<1x10x10x4xf32, #tpu.memory_space<vmem>>, vector<1x8x8x4xf32>
    %c0_26 = arith.constant 0 : index
    %c0_27 = arith.constant 0 : index
    %c1_28 = arith.constant 1 : index
    %c0_29 = arith.constant 0 : index
    %11 = vector.load %arg9[%c0_26, %c0_27, %c1_28, %c0_29] : memref<1x10x10x4xf32, #tpu.memory_space<vmem>>, vector<1x8x8x4xf32>
    %c0_30 = arith.constant 0 : index
    %c0_31 = arith.constant 0 : index
    %c2 = arith.constant 2 : index
    %c0_32 = arith.constant 0 : index
    %12 = vector.load %arg9[%c0_30, %c0_31, %c2, %c0_32] : memref<1x10x10x4xf32, #tpu.memory_space<vmem>>, vector<1x8x8x4xf32>
    %c0_33 = arith.constant 0 : index
    %c1_34 = arith.constant 1 : index
    %c0_35 = arith.constant 0 : index
    %c0_36 = arith.constant 0 : index
    %13 = vector.load %arg9[%c0_33, %c1_34, %c0_35, %c0_36] : memref<1x10x10x4xf32, #tpu.memory_space<vmem>>, vector<1x8x8x4xf32>
    %c0_37 = arith.constant 0 : index
    %c1_38 = arith.constant 1 : index
    %c1_39 = arith.constant 1 : index
    %c0_40 = arith.constant 0 : index
    %14 = vector.load %arg9[%c0_37, %c1_38, %c1_39, %c0_40] : memref<1x10x10x4xf32, #tpu.memory_space<vmem>>, vector<1x8x8x4xf32>
    %c0_41 = arith.constant 0 : index
    %c1_42 = arith.constant 1 : index
    %c2_43 = arith.constant 2 : index
    %c0_44 = arith.constant 0 : index
    %15 = vector.load %arg9[%c0_41, %c1_42, %c2_43, %c0_44] : memref<1x10x10x4xf32, #tpu.memory_space<vmem>>, vector<1x8x8x4xf32>
    %c0_45 = arith.constant 0 : index
    %c2_46 = arith.constant 2 : index
    %c0_47 = arith.constant 0 : index
    %c0_48 = arith.constant 0 : index
    %16 = vector.load %arg9[%c0_45, %c2_46, %c0_47, %c0_48] : memref<1x10x10x4xf32, #tpu.memory_space<vmem>>, vector<1x8x8x4xf32>
    %c0_49 = arith.constant 0 : index
    %c2_50 = arith.constant 2 : index
    %c1_51 = arith.constant 1 : index
    %c0_52 = arith.constant 0 : index
    %17 = vector.load %arg9[%c0_49, %c2_50, %c1_51, %c0_52] : memref<1x10x10x4xf32, #tpu.memory_space<vmem>>, vector<1x8x8x4xf32>
    %c0_53 = arith.constant 0 : index
    %c2_54 = arith.constant 2 : index
    %c2_55 = arith.constant 2 : index
    %c0_56 = arith.constant 0 : index
    %18 = vector.load %arg9[%c0_53, %c2_54, %c2_55, %c0_56] : memref<1x10x10x4xf32, #tpu.memory_space<vmem>>, vector<1x8x8x4xf32>
    %19 = tpu.concatenate %10, %11, %12, %13, %14, %15, %16, %17, %18 in 3 : vector<1x8x8x4xf32>, vector<1x8x8x4xf32>, vector<1x8x8x4xf32>, vector<1x8x8x4xf32>, vector<1x8x8x4xf32>, vector<1x8x8x4xf32>, vector<1x8x8x4xf32>, vector<1x8x8x4xf32>, vector<1x8x8x4xf32> -> vector<1x8x8x36xf32>
    %20 = vector.shape_cast %19 : vector<1x8x8x36xf32> to vector<64x36xf32>
    %c0_57 = arith.constant 0 : index
    %c0_58 = arith.constant 0 : index
    %21 = vector.load %arg5[%c0_57, %c0_58] : memref<36x8xf32, #tpu.memory_space<vmem>>, vector<36x8xf32>
    %cst_59 = arith.constant dense<0.000000e+00> : vector<64x8xf32>
    %22 = tpu.matmul %20, %21, %cst_59 {dimension_numbers = #tpu.dot_dimension_numbers<[1], [0], [0], [1], [0, 0, 1, 1], [], []>} : vector<64x36xf32>, vector<36x8xf32>, vector<64x8xf32> -> vector<64x8xf32>
    %23 = vector.shape_cast %22 : vector<64x8xf32> to vector<1x8x8x8xf32>
    %c0_60 = arith.constant 0 : index
    %c0_61 = arith.constant 0 : index
    %c0_62 = arith.constant 0 : index
    %c0_63 = arith.constant 0 : index
    %24 = vector.load %arg6[%c0_60, %c0_61, %c0_62, %c0_63] : memref<1x8x8x8xf32, #tpu.memory_space<vmem>>, vector<1x8x8x8xf32>
    tpu.vector_store %arg6[%c0_60, %c0_61, %c0_62, %c0_63], %23 {strides = array<i32>} : memref<1x8x8x8xf32, #tpu.memory_space<vmem>>, vector<1x8x8x8xf32>,
    %cst_64 = arith.constant dense<0.000000e+00> : vector<8xf32>
    %25 = vector.multi_reduction <add>, %22, %cst_64 [0] : vector<64x8xf32> to vector<8xf32>
    %26 = vector.shape_cast %25 : vector<8xf32> to vector<1x8xf32>
    %27 = vector.shape_cast %26 : vector<1x8xf32> to vector<1x1x8xf32>
    %c0_65 = arith.constant 0 : index
    %c0_66 = arith.constant 0 : index
    %c0_67 = arith.constant 0 : index
    %28 = vector.load %arg7[%c0_65, %c0_66, %c0_67] : memref<1x1x8xf32, #tpu.memory_space<vmem>>, vector<1x1x8xf32>
    tpu.vector_store %arg7[%c0_65, %c0_66, %c0_67], %27 {strides = array<i32>} : memref<1x1x8xf32, #tpu.memory_space<vmem>>, vector<1x1x8xf32>,
    %29 = arith.mulf %22, %22 : vector<64x8xf32>
    %cst_68 = arith.constant dense<0.000000e+00> : vector<8xf32>
    %30 = vector.multi_reduction <add>, %29, %cst_68 [0] : vector<64x8xf32> to vector<8xf32>
    %31 = vector.shape_cast %30 : vector<8xf32> to vector<1x8xf32>
    %32 = vector.shape_cast %31 : vector<1x8xf32> to vector<1x1x8xf32>
    %c0_69 = arith.constant 0 : index
    %c0_70 = arith.constant 0 : index
    %c0_71 = arith.constant 0 : index
    %33 = vector.load %arg8[%c0_69, %c0_70, %c0_71] : memref<1x1x8xf32, #tpu.memory_space<vmem>>, vector<1x1x8xf32>
    tpu.vector_store %arg8[%c0_69, %c0_70, %c0_71], %32 {strides = array<i32>} : memref<1x1x8xf32, #tpu.memory_space<vmem>>, vector<1x1x8xf32>,
    return
  }
  func.func @transform_0(%arg0: i32, %arg1: i32) -> (i32, i32, i32, i32) {
    %c0_i32 = arith.constant 0 : i32
    %c0_i32_0 = arith.constant 0 : i32
    %c0_i32_1 = arith.constant 0 : i32
    %c0_i32_2 = arith.constant 0 : i32
    return %arg0, %c0_i32, %c0_i32_0, %c0_i32_1 : i32, i32, i32, i32
  }
  func.func @transform_1(%arg0: i32, %arg1: i32) -> (i32, i32) {
    %c0_i32 = arith.constant 0 : i32
    %c0_i32_0 = arith.constant 0 : i32
    %c0_i32_1 = arith.constant 0 : i32
    return %c0_i32, %c0_i32_0 : i32, i32
  }
  func.func @transform_2(%arg0: i32, %arg1: i32) -> (i32, i32) {
    %c0_i32 = arith.constant 0 : i32
    %c0_i32_0 = arith.constant 0 : i32
    %c0_i32_1 = arith.constant 0 : i32
    return %c0_i32, %c0_i32_0 : i32, i32
  }
  func.func @transform_3(%arg0: i32, %arg1: i32) -> (i32, i32) {
    %c0_i32 = arith.constant 0 : i32
    %c0_i32_0 = arith.constant 0 : i32
    return %c0_i32, %arg1 : i32, i32
  }
  func.func @transform_4(%arg0: i32, %arg1: i32) -> (i32, i32, i32, i32) {
    %c0_i32 = arith.constant 0 : i32
    %c0_i32_0 = arith.constant 0 : i32
    %c0_i32_1 = arith.constant 0 : i32
    return %arg0, %c0_i32, %c0_i32_0, %arg1 : i32, i32, i32, i32
  }
  func.func @transform_5(%arg0: i32, %arg1: i32) -> (i32, i32, i32) {
    %c0_i32 = arith.constant 0 : i32
    %c0_i32_0 = arith.constant 0 : i32
    return %arg0, %c0_i32, %arg1 : i32, i32, i32
  }
  func.func @transform_6(%arg0: i32, %arg1: i32) -> (i32, i32, i32) {
    %c0_i32 = arith.constant 0 : i32
    %c0_i32_0 = arith.constant 0 : i32
    return %arg0, %c0_i32, %arg1 : i32, i32, i32
  }
}

module attributes {stable_mosaic.version = 11 : i64} {
  func.func @_conv_bn_stats_kernel(%arg0: i32, %arg1: i32, %arg2: memref<1x8x8x8xf32, #tpu.memory_space<vmem>>, %arg3: memref<1x8xf32, #tpu.memory_space<vmem>>, %arg4: memref<1x8xf32, #tpu.memory_space<vmem>>, %arg5: memref<72x8xf32, #tpu.memory_space<vmem>>, %arg6: memref<1x8x8x8xf32, #tpu.memory_space<vmem>>, %arg7: memref<1x1x8xf32, #tpu.memory_space<vmem>>, %arg8: memref<1x1x8xf32, #tpu.memory_space<vmem>>, %arg9: memref<1x10x10x8xf32, #tpu.memory_space<vmem>>) attributes {dimension_semantics = [#tpu.dimension_semantics<parallel>, #tpu.dimension_semantics<parallel>], iteration_bounds = array<i64: 2, 1>, scalar_prefetch = 0 : i64, scratch_operands = 1 : i64, tpu.core_type = #tpu.core_type<tc>, window_params = [{transform_indices = @transform_0, window_bounds = array<i64: 1, 8, 8, 8>}, {pipeline_mode = #tpu.pipeline_mode<synchronous>, transform_indices = @transform_1, window_bounds = array<i64: 1, 8>}, {pipeline_mode = #tpu.pipeline_mode<synchronous>, transform_indices = @transform_2, window_bounds = array<i64: 1, 8>}, {transform_indices = @transform_3, window_bounds = array<i64: 72, 8>}, {transform_indices = @transform_4, window_bounds = array<i64: 1, 8, 8, 8>}, {transform_indices = @transform_5, window_bounds = array<i64: 1, 1, 8>}, {transform_indices = @transform_6, window_bounds = array<i64: 1, 1, 8>}]} {
    %c0 = arith.constant 0 : index
    %c0_0 = arith.constant 0 : index
    %c0_1 = arith.constant 0 : index
    %c0_2 = arith.constant 0 : index
    %0 = vector.load %arg2[%c0, %c0_0, %c0_1, %c0_2] : memref<1x8x8x8xf32, #tpu.memory_space<vmem>>, vector<1x8x8x8xf32>
    %c0_3 = arith.constant 0 : index
    %c0_4 = arith.constant 0 : index
    %1 = vector.load %arg3[%c0_3, %c0_4] : memref<1x8xf32, #tpu.memory_space<vmem>>, vector<1x8xf32>
    %2 = vector.shape_cast %1 : vector<1x8xf32> to vector<1x1x1x8xf32>
    %3 = vector.broadcast %2 : vector<1x1x1x8xf32> to vector<1x8x8x8xf32>
    %4 = arith.mulf %0, %3 : vector<1x8x8x8xf32>
    %c0_5 = arith.constant 0 : index
    %c0_6 = arith.constant 0 : index
    %5 = vector.load %arg4[%c0_5, %c0_6] : memref<1x8xf32, #tpu.memory_space<vmem>>, vector<1x8xf32>
    %6 = vector.shape_cast %5 : vector<1x8xf32> to vector<1x1x1x8xf32>
    %7 = vector.broadcast %6 : vector<1x1x1x8xf32> to vector<1x8x8x8xf32>
    %8 = arith.addf %4, %7 : vector<1x8x8x8xf32>
    %cst = arith.constant 0.000000e+00 : f32
    %9 = vector.broadcast %cst : f32 to vector<1x8x8x8xf32>
    %10 = arith.maximumf %8, %9 : vector<1x8x8x8xf32>
    %cst_7 = arith.constant 0.000000e+00 : f32
    %11 = vector.broadcast %cst_7 : f32 to vector<1x10x10x8xf32>
    %c0_8 = arith.constant 0 : index
    %c0_9 = arith.constant 0 : index
    %c0_10 = arith.constant 0 : index
    %c0_11 = arith.constant 0 : index
    %12 = vector.load %arg9[%c0_8, %c0_9, %c0_10, %c0_11] : memref<1x10x10x8xf32, #tpu.memory_space<vmem>>, vector<1x10x10x8xf32>
    tpu.vector_store %arg9[%c0_8, %c0_9, %c0_10, %c0_11], %11 {strides = array<i32>} : memref<1x10x10x8xf32, #tpu.memory_space<vmem>>, vector<1x10x10x8xf32>,
    %c0_12 = arith.constant 0 : index
    %c1 = arith.constant 1 : index
    %c1_13 = arith.constant 1 : index
    %c0_14 = arith.constant 0 : index
    %13 = vector.load %arg9[%c0_12, %c1, %c1_13, %c0_14] : memref<1x10x10x8xf32, #tpu.memory_space<vmem>>, vector<1x8x8x8xf32>
    tpu.vector_store %arg9[%c0_12, %c1, %c1_13, %c0_14], %10 {strides = array<i32>} : memref<1x10x10x8xf32, #tpu.memory_space<vmem>>, vector<1x8x8x8xf32>,
    %c0_15 = arith.constant 0 : index
    %c0_16 = arith.constant 0 : index
    %c0_17 = arith.constant 0 : index
    %c0_18 = arith.constant 0 : index
    %14 = vector.load %arg9[%c0_15, %c0_16, %c0_17, %c0_18] : memref<1x10x10x8xf32, #tpu.memory_space<vmem>>, vector<1x8x8x8xf32>
    %c0_19 = arith.constant 0 : index
    %c0_20 = arith.constant 0 : index
    %c1_21 = arith.constant 1 : index
    %c0_22 = arith.constant 0 : index
    %15 = vector.load %arg9[%c0_19, %c0_20, %c1_21, %c0_22] : memref<1x10x10x8xf32, #tpu.memory_space<vmem>>, vector<1x8x8x8xf32>
    %c0_23 = arith.constant 0 : index
    %c0_24 = arith.constant 0 : index
    %c2 = arith.constant 2 : index
    %c0_25 = arith.constant 0 : index
    %16 = vector.load %arg9[%c0_23, %c0_24, %c2, %c0_25] : memref<1x10x10x8xf32, #tpu.memory_space<vmem>>, vector<1x8x8x8xf32>
    %c0_26 = arith.constant 0 : index
    %c1_27 = arith.constant 1 : index
    %c0_28 = arith.constant 0 : index
    %c0_29 = arith.constant 0 : index
    %17 = vector.load %arg9[%c0_26, %c1_27, %c0_28, %c0_29] : memref<1x10x10x8xf32, #tpu.memory_space<vmem>>, vector<1x8x8x8xf32>
    %c0_30 = arith.constant 0 : index
    %c1_31 = arith.constant 1 : index
    %c1_32 = arith.constant 1 : index
    %c0_33 = arith.constant 0 : index
    %18 = vector.load %arg9[%c0_30, %c1_31, %c1_32, %c0_33] : memref<1x10x10x8xf32, #tpu.memory_space<vmem>>, vector<1x8x8x8xf32>
    %c0_34 = arith.constant 0 : index
    %c1_35 = arith.constant 1 : index
    %c2_36 = arith.constant 2 : index
    %c0_37 = arith.constant 0 : index
    %19 = vector.load %arg9[%c0_34, %c1_35, %c2_36, %c0_37] : memref<1x10x10x8xf32, #tpu.memory_space<vmem>>, vector<1x8x8x8xf32>
    %c0_38 = arith.constant 0 : index
    %c2_39 = arith.constant 2 : index
    %c0_40 = arith.constant 0 : index
    %c0_41 = arith.constant 0 : index
    %20 = vector.load %arg9[%c0_38, %c2_39, %c0_40, %c0_41] : memref<1x10x10x8xf32, #tpu.memory_space<vmem>>, vector<1x8x8x8xf32>
    %c0_42 = arith.constant 0 : index
    %c2_43 = arith.constant 2 : index
    %c1_44 = arith.constant 1 : index
    %c0_45 = arith.constant 0 : index
    %21 = vector.load %arg9[%c0_42, %c2_43, %c1_44, %c0_45] : memref<1x10x10x8xf32, #tpu.memory_space<vmem>>, vector<1x8x8x8xf32>
    %c0_46 = arith.constant 0 : index
    %c2_47 = arith.constant 2 : index
    %c2_48 = arith.constant 2 : index
    %c0_49 = arith.constant 0 : index
    %22 = vector.load %arg9[%c0_46, %c2_47, %c2_48, %c0_49] : memref<1x10x10x8xf32, #tpu.memory_space<vmem>>, vector<1x8x8x8xf32>
    %23 = tpu.concatenate %14, %15, %16, %17, %18, %19, %20, %21, %22 in 3 : vector<1x8x8x8xf32>, vector<1x8x8x8xf32>, vector<1x8x8x8xf32>, vector<1x8x8x8xf32>, vector<1x8x8x8xf32>, vector<1x8x8x8xf32>, vector<1x8x8x8xf32>, vector<1x8x8x8xf32>, vector<1x8x8x8xf32> -> vector<1x8x8x72xf32>
    %24 = vector.shape_cast %23 : vector<1x8x8x72xf32> to vector<64x72xf32>
    %c0_50 = arith.constant 0 : index
    %c0_51 = arith.constant 0 : index
    %25 = vector.load %arg5[%c0_50, %c0_51] : memref<72x8xf32, #tpu.memory_space<vmem>>, vector<72x8xf32>
    %cst_52 = arith.constant dense<0.000000e+00> : vector<64x8xf32>
    %26 = tpu.matmul %24, %25, %cst_52 {dimension_numbers = #tpu.dot_dimension_numbers<[1], [0], [0], [1], [0, 0, 1, 1], [], []>} : vector<64x72xf32>, vector<72x8xf32>, vector<64x8xf32> -> vector<64x8xf32>
    %27 = vector.shape_cast %26 : vector<64x8xf32> to vector<1x8x8x8xf32>
    %c0_53 = arith.constant 0 : index
    %c0_54 = arith.constant 0 : index
    %c0_55 = arith.constant 0 : index
    %c0_56 = arith.constant 0 : index
    %28 = vector.load %arg6[%c0_53, %c0_54, %c0_55, %c0_56] : memref<1x8x8x8xf32, #tpu.memory_space<vmem>>, vector<1x8x8x8xf32>
    tpu.vector_store %arg6[%c0_53, %c0_54, %c0_55, %c0_56], %27 {strides = array<i32>} : memref<1x8x8x8xf32, #tpu.memory_space<vmem>>, vector<1x8x8x8xf32>,
    %cst_57 = arith.constant dense<0.000000e+00> : vector<8xf32>
    %29 = vector.multi_reduction <add>, %26, %cst_57 [0] : vector<64x8xf32> to vector<8xf32>
    %30 = vector.shape_cast %29 : vector<8xf32> to vector<1x8xf32>
    %31 = vector.shape_cast %30 : vector<1x8xf32> to vector<1x1x8xf32>
    %c0_58 = arith.constant 0 : index
    %c0_59 = arith.constant 0 : index
    %c0_60 = arith.constant 0 : index
    %32 = vector.load %arg7[%c0_58, %c0_59, %c0_60] : memref<1x1x8xf32, #tpu.memory_space<vmem>>, vector<1x1x8xf32>
    tpu.vector_store %arg7[%c0_58, %c0_59, %c0_60], %31 {strides = array<i32>} : memref<1x1x8xf32, #tpu.memory_space<vmem>>, vector<1x1x8xf32>,
    %33 = arith.mulf %26, %26 : vector<64x8xf32>
    %cst_61 = arith.constant dense<0.000000e+00> : vector<8xf32>
    %34 = vector.multi_reduction <add>, %33, %cst_61 [0] : vector<64x8xf32> to vector<8xf32>
    %35 = vector.shape_cast %34 : vector<8xf32> to vector<1x8xf32>
    %36 = vector.shape_cast %35 : vector<1x8xf32> to vector<1x1x8xf32>
    %c0_62 = arith.constant 0 : index
    %c0_63 = arith.constant 0 : index
    %c0_64 = arith.constant 0 : index
    %37 = vector.load %arg8[%c0_62, %c0_63, %c0_64] : memref<1x1x8xf32, #tpu.memory_space<vmem>>, vector<1x1x8xf32>
    tpu.vector_store %arg8[%c0_62, %c0_63, %c0_64], %36 {strides = array<i32>} : memref<1x1x8xf32, #tpu.memory_space<vmem>>, vector<1x1x8xf32>,
    return
  }
  func.func @transform_0(%arg0: i32, %arg1: i32) -> (i32, i32, i32, i32) {
    %c0_i32 = arith.constant 0 : i32
    %c0_i32_0 = arith.constant 0 : i32
    %c0_i32_1 = arith.constant 0 : i32
    %c0_i32_2 = arith.constant 0 : i32
    return %arg0, %c0_i32, %c0_i32_0, %c0_i32_1 : i32, i32, i32, i32
  }
  func.func @transform_1(%arg0: i32, %arg1: i32) -> (i32, i32) {
    %c0_i32 = arith.constant 0 : i32
    %c0_i32_0 = arith.constant 0 : i32
    %c0_i32_1 = arith.constant 0 : i32
    return %c0_i32, %c0_i32_0 : i32, i32
  }
  func.func @transform_2(%arg0: i32, %arg1: i32) -> (i32, i32) {
    %c0_i32 = arith.constant 0 : i32
    %c0_i32_0 = arith.constant 0 : i32
    %c0_i32_1 = arith.constant 0 : i32
    return %c0_i32, %c0_i32_0 : i32, i32
  }
  func.func @transform_3(%arg0: i32, %arg1: i32) -> (i32, i32) {
    %c0_i32 = arith.constant 0 : i32
    %c0_i32_0 = arith.constant 0 : i32
    return %c0_i32, %arg1 : i32, i32
  }
  func.func @transform_4(%arg0: i32, %arg1: i32) -> (i32, i32, i32, i32) {
    %c0_i32 = arith.constant 0 : i32
    %c0_i32_0 = arith.constant 0 : i32
    %c0_i32_1 = arith.constant 0 : i32
    return %arg0, %c0_i32, %c0_i32_0, %arg1 : i32, i32, i32, i32
  }
  func.func @transform_5(%arg0: i32, %arg1: i32) -> (i32, i32, i32) {
    %c0_i32 = arith.constant 0 : i32
    %c0_i32_0 = arith.constant 0 : i32
    return %arg0, %c0_i32, %arg1 : i32, i32, i32
  }
  func.func @transform_6(%arg0: i32, %arg1: i32) -> (i32, i32, i32) {
    %c0_i32 = arith.constant 0 : i32
    %c0_i32_0 = arith.constant 0 : i32
    return %arg0, %c0_i32, %arg1 : i32, i32, i32
  }
}

module attributes {stable_mosaic.version = 11 : i64} {
  func.func @_bn_relu_kernel(%arg0: i32, %arg1: memref<1x8x8x8xf32, #tpu.memory_space<vmem>>, %arg2: memref<1x8xf32, #tpu.memory_space<vmem>>, %arg3: memref<1x8xf32, #tpu.memory_space<vmem>>, %arg4: memref<1x8x8x8xf32, #tpu.memory_space<vmem>>) attributes {dimension_semantics = [#tpu.dimension_semantics<parallel>], iteration_bounds = array<i64: 2>, scalar_prefetch = 0 : i64, scratch_operands = 0 : i64, tpu.core_type = #tpu.core_type<tc>, window_params = [{transform_indices = @transform_0, window_bounds = array<i64: 1, 8, 8, 8>}, {pipeline_mode = #tpu.pipeline_mode<synchronous>, transform_indices = @transform_1, window_bounds = array<i64: 1, 8>}, {pipeline_mode = #tpu.pipeline_mode<synchronous>, transform_indices = @transform_2, window_bounds = array<i64: 1, 8>}, {transform_indices = @transform_3, window_bounds = array<i64: 1, 8, 8, 8>}]} {
    %c0 = arith.constant 0 : index
    %c0_0 = arith.constant 0 : index
    %c0_1 = arith.constant 0 : index
    %c0_2 = arith.constant 0 : index
    %0 = vector.load %arg1[%c0, %c0_0, %c0_1, %c0_2] : memref<1x8x8x8xf32, #tpu.memory_space<vmem>>, vector<1x8x8x8xf32>
    %c0_3 = arith.constant 0 : index
    %c0_4 = arith.constant 0 : index
    %1 = vector.load %arg2[%c0_3, %c0_4] : memref<1x8xf32, #tpu.memory_space<vmem>>, vector<1x8xf32>
    %2 = vector.shape_cast %1 : vector<1x8xf32> to vector<1x1x1x8xf32>
    %3 = vector.broadcast %2 : vector<1x1x1x8xf32> to vector<1x8x8x8xf32>
    %4 = arith.mulf %0, %3 : vector<1x8x8x8xf32>
    %c0_5 = arith.constant 0 : index
    %c0_6 = arith.constant 0 : index
    %5 = vector.load %arg3[%c0_5, %c0_6] : memref<1x8xf32, #tpu.memory_space<vmem>>, vector<1x8xf32>
    %6 = vector.shape_cast %5 : vector<1x8xf32> to vector<1x1x1x8xf32>
    %7 = vector.broadcast %6 : vector<1x1x1x8xf32> to vector<1x8x8x8xf32>
    %8 = arith.addf %4, %7 : vector<1x8x8x8xf32>
    %cst = arith.constant 0.000000e+00 : f32
    %9 = vector.broadcast %cst : f32 to vector<1x8x8x8xf32>
    %10 = arith.maximumf %8, %9 : vector<1x8x8x8xf32>
    %c0_7 = arith.constant 0 : index
    %c0_8 = arith.constant 0 : index
    %c0_9 = arith.constant 0 : index
    %c0_10 = arith.constant 0 : index
    %11 = vector.load %arg4[%c0_7, %c0_8, %c0_9, %c0_10] : memref<1x8x8x8xf32, #tpu.memory_space<vmem>>, vector<1x8x8x8xf32>
    tpu.vector_store %arg4[%c0_7, %c0_8, %c0_9, %c0_10], %10 {strides = array<i32>} : memref<1x8x8x8xf32, #tpu.memory_space<vmem>>, vector<1x8x8x8xf32>,
    return
  }
  func.func @transform_0(%arg0: i32) -> (i32, i32, i32, i32) {
    %c0_i32 = arith.constant 0 : i32
    %c0_i32_0 = arith.constant 0 : i32
    %c0_i32_1 = arith.constant 0 : i32
    %c0_i32_2 = arith.constant 0 : i32
    return %arg0, %c0_i32, %c0_i32_0, %c0_i32_1 : i32, i32, i32, i32
  }
  func.func @transform_1(%arg0: i32) -> (i32, i32) {
    %c0_i32 = arith.constant 0 : i32
    %c0_i32_0 = arith.constant 0 : i32
    %c0_i32_1 = arith.constant 0 : i32
    return %c0_i32, %c0_i32_0 : i32, i32
  }
  func.func @transform_2(%arg0: i32) -> (i32, i32) {
    %c0_i32 = arith.constant 0 : i32
    %c0_i32_0 = arith.constant 0 : i32
    %c0_i32_1 = arith.constant 0 : i32
    return %c0_i32, %c0_i32_0 : i32, i32
  }
  func.func @transform_3(%arg0: i32) -> (i32, i32, i32, i32) {
    %c0_i32 = arith.constant 0 : i32
    %c0_i32_0 = arith.constant 0 : i32
    %c0_i32_1 = arith.constant 0 : i32
    %c0_i32_2 = arith.constant 0 : i32
    return %arg0, %c0_i32, %c0_i32_0, %c0_i32_1 : i32, i32, i32, i32
  }
}

</mosaic_0001>

<bundles_post_ra>
// kernel: down_block.3
= control target key start
LH: loop header
LB: loop body
LE: loop exit
PB: predicated region body
PF: predicated region fallthrough
CT: control target
= control target key end

     0   :  { %s1422_s21 = smov 0   ;;  %s1424_s22 = smov 0   ;;  %s1755_s0 = inlined_call_operand.vmem [shape: f32[2,16,16,4], index: 0, kind: input, shape index: {}]   ;;  %s1756_s1 = inlined_call_operand.vmem [shape: f32[1,4], index: 1, kind: input, shape index: {}]   ;;  %s1757_s2 = inlined_call_operand.vmem [shape: f32[1,4], index: 2, kind: input, shape index: {}]   ;;  %s1758_s3 = inlined_call_operand.vmem [shape: f32[36,8], index: 3, kind: input, shape index: {}]   ;;  %s1759_s4 = inlined_call_operand.vmem [shape: f32[2,8,8,8], index: 4, kind: output, shape index: {0}]   ;;  %s1760_s5 = inlined_call_operand.vmem [shape: f32[2,1,8], index: 5, kind: output, shape index: {1}]   ;;  %s1761_s6 = inlined_call_operand.vmem [shape: f32[2,1,8], index: 6, kind: output, shape index: {2}]  }
   0x1   :  { %s1426_s1 = smov 0  }
   0x2 LB: > { %s29_s2 = sadd.s32 1, %s1372_s22  ;;  %p1223_p0 = scmp.ge.s32.totalorder %s1376_s1, 1  ;;  %s1376_s1 = sphi %s1426_s1, %s17_s1   ;;  %s1372_s22 = sphi %s1424_s22, %s1763_s22   ;;  %s1368_s21 = sphi %s1422_s21, %s1762_s21  }
   0x3   : > { %p31_p1 = scmp.ge.s32.totalorder %s29_s2, 2  ;;  %p244_p2 = scmp.lt.s32.totalorder %s1376_s1, 3 }
   0x5   : > { %s1765_s2 = smov (%p31_p1, %s29_s2), 0  ;;  %p245_p3 = pnand %p1223_p0, %p244_p2 }
   0x6   : > { %vm409_vm0 = vcmask (!%p245_p3), 31744   ;;  %vm411_vm1 = vcmask (!%p245_p3), 25600   ;;  %v1378_v0 = vmov (!%p245_p3), 0.0   ;;  %p293_p4 = scmp.lt.s32.totalorder (!%p245_p3), %s1368_s21, 1  ;;  %s1379_s27 = smov (!%p245_p3), 8   ;;  %vm870_vm2 = vcmask (!%p245_p3), 1043456  }
   0x7   : > { %248 = sbr.rel (%p245_p3) target bundleno = 502 (0x1f6), region = 36  ;;  %410 = vst.msk [vmem:[#allocation2] sm:$0xff] (!%p245_p3), %vm409_vm0, %v1378_v0  ;;  %413 = vst.msk [vmem:[#allocation2 + $0x10] sm:$0xff] (!%p245_p3), %vm409_vm0, %v1378_v0  ;;  %s1380_s28 = smov (!%p245_p3), 4   ;;  %vm777_vm3 = vcmask (!%p245_p3), 64512   ;;  %vm786_vm4 = vcmask (!%p245_p3), 97280  }
   0x8   : > { %412 = vst.msk [vmem:[#allocation2 + $0x8] sm:$0x3] (!%p245_p3), %vm411_vm1, %v1378_v0  ;;  %414 = vst.msk [vmem:[#allocation2 + $0x18] sm:$0x3] (!%p245_p3), %vm411_vm1, %v1378_v0  ;;  %s1381_s29 = smov (!%p245_p3), 12   ;;  %s1382_s30 = smov (!%p245_p3), 16  }
   0x9   : > { %415 = vst.msk [vmem:[#allocation2 + $0x20] sm:$0xff] (!%p245_p3), %vm409_vm0, %v1378_v0  ;;  %417 = vst.msk [vmem:[#allocation2 + $0x30] sm:$0xff] (!%p245_p3), %vm409_vm0, %v1378_v0  ;;  %s1383_s7 = smov (!%p245_p3), 20   ;;  %s1384_s12 = smov (!%p245_p3), 24   ;;  %vm795_vm5 = vcmask (!%p245_p3), 130048   ;;  %vm804_vm6 = vcmask (!%p245_p3), 162816  }
   0xa   : > { %416 = vst.msk [vmem:[#allocation2 + $0x28] sm:$0x3] (!%p245_p3), %vm411_vm1, %v1378_v0  ;;  %418 = vst.msk [vmem:[#allocation2 + $0x38] sm:$0x3] (!%p245_p3), %vm411_vm1, %v1378_v0  ;;  %s1385_s19 = smov (!%p245_p3), 28   ;;  %s1386_s20 = smov (!%p245_p3), 32  }
   0xb   : > { %419 = vst.msk [vmem:[#allocation2 + $0x40] sm:$0xff] (!%p245_p3), %vm409_vm0, %v1378_v0  ;;  %421 = vst.msk [vmem:[#allocation2 + $0x50] sm:$0xff] (!%p245_p3), %vm409_vm0, %v1378_v0  ;;  %vm813_vm7 = vcmask (!%p245_p3), 195584   ;;  %vm822_vm8 = vcmask (!%p245_p3), 228352   ;;  %vm831_vm9 = vcmask (!%p245_p3), 261120   ;;  %vm845_vm10 = vcmask (!%p245_p3), 293888  }
   0xc   : > { %420 = vst.msk [vmem:[#allocation2 + $0x48] sm:$0x3] (!%p245_p3), %vm411_vm1, %v1378_v0  ;;  %422 = vst.msk [vmem:[#allocation2 + $0x58] sm:$0x3] (!%p245_p3), %vm411_vm1, %v1378_v0  ;;  %vm1008_vm11 = vcmask (!%p245_p3), 57344  }
   0xd   : > { %423 = vst.msk [vmem:[#allocation2 + $0x60] sm:$0xff] (!%p245_p3), %vm409_vm0, %v1378_v0  ;;  %425 = vst.msk [vmem:[#allocation2 + $0x70] sm:$0xff] (!%p245_p3), %vm409_vm0, %v1378_v0 }
   0xe   : > { %424 = vst.msk [vmem:[#allocation2 + $0x68] sm:$0x3] %vm411_vm1, %v1378_v0  ;;  %426 = vst.msk [vmem:[#allocation2 + $0x78] sm:$0x3] %vm411_vm1, %v1378_v0  ;;  %s1767_s21 = smov (!%p293_p4, %s1368_s21), 1 }
   0xf   : > { %427 = vst.msk [vmem:[#allocation2 + $0x80] sm:$0xff] %vm409_vm0, %v1378_v0  ;;  %429 = vst.msk [vmem:[#allocation2 + $0x90] sm:$0xff] %vm409_vm0, %v1378_v0  ;;  %s1270_s23 = sshll.u32 %s1767_s21, 8  ;;  %v456_v4 = vld [vmem:[#allocation2 + $0x2] sm:$0xff]  ;;  %s321_s8 = scalar_lea.vmem %s1761_s6, %s1767_s21 }
  0x10   : > { %428 = vst.msk [vmem:[#allocation2 + $0x88] sm:$0x3] %vm411_vm1, %v1378_v0  ;;  %430 = vst.msk [vmem:[#allocation2 + $0x98] sm:$0x3] %vm411_vm1, %v1378_v0  ;;  %s1470_s26 = scalar_lea.vmem %s1755_s0, %s1270_s23  ;;  %v448_v5 = vld [vmem:[#allocation2 + $0x1] sm:$0xff]  ;;  %553 = vrot.lane.b32.xlu1 %v456_v4, %s1379_s27  ;;  %s1271_s23 = sshll.u32 %s1767_s21, 6 }
  0x11   : > { %v322_v1 = vld [vmem:[%s1470_s26] ss:$2 sm:$0xff]  ;;  %v1235_v2 = vld [vmem:[%s1470_s26 + $0x1] ss:$2 sm:$0xff]  ;;  %v1243_v3 = vld [vmem:[%s1470_s26 + $0x10] ss:$2 sm:$0xff]  ;;  %521 = vrot.lane.b32.xlu0 %v448_v5, %s1380_s28 }
  0x12   : > { %v1251_v6 = vld [vmem:[%s1470_s26 + $0x11] ss:$2 sm:$0xff]  ;;  %v385_v7 = vmax.f32 %v322_v1, %v1235_v2  ;;  %v1228_v9 = vld [vmem:[%s1470_s26 + $0x20] ss:$2 sm:$0xff]  ;;  %v1236_v10 = vld [vmem:[%s1470_s26 + $0x21] ss:$2 sm:$0xff] }
  0x13   : > { %v393_v8 = vmax.f32 %v1243_v3, %v1251_v6  ;;  %v1244_v11 = vld [vmem:[%s1470_s26 + $0x30] ss:$2 sm:$0xff]  ;;  %v1252_v12 = vld [vmem:[%s1470_s26 + $0x31] ss:$2 sm:$0xff]  ;;  %v386_v13 = vmax.f32 %v1228_v9, %v1236_v10  ;;  %v1229_v14 = vld [vmem:[%s1470_s26 + $0x40] ss:$2 sm:$0xff] }
  0x14   : > { %v394_v16 = vmax.f32 %v1244_v11, %v1252_v12  ;;  %v1237_v17 = vld [vmem:[%s1470_s26 + $0x41] ss:$2 sm:$0xff]  ;;  %v1245_v18 = vld [vmem:[%s1470_s26 + $0x50] ss:$2 sm:$0xff]  ;;  %v1253_v19 = vld [vmem:[%s1470_s26 + $0x51] ss:$2 sm:$0xff] }
  0x15   : > { %v401_v15 = vmax.f32 %v385_v7, %v393_v8  ;;  %v387_v20 = vmax.f32 %v1229_v14, %v1237_v17  ;;  %v395_v21 = vmax.f32 %v1245_v18, %v1253_v19  ;;  %v1230_v22 = vld [vmem:[%s1470_s26 + $0x60] ss:$2 sm:$0xff]  ;;  %v1238_v23 = vld [vmem:[%s1470_s26 + $0x61] ss:$2 sm:$0xff]  ;;  %v1246_v24 = vld [vmem:[%s1470_s26 + $0x70] ss:$2 sm:$0xff] }
  0x16   : > { %v402_v25 = vmax.f32 %v386_v13, %v394_v16  ;;  %v1254_v26 = vld [vmem:[%s1470_s26 + $0x71] ss:$2 sm:$0xff]  ;;  %v388_v27 = vmax.f32 %v1230_v22, %v1238_v23  ;;  %v1231_v28 = vld [vmem:[%s1470_s26 + $0x80] ss:$2 sm:$0xff]  ;;  %v1239_v29 = vld [vmem:[%s1470_s26 + $0x81] ss:$2 sm:$0xff] }
  0x17   : > { %432 = vst.msk [vmem:[#allocation2 + $0x11] sm:$0xff] %vm409_vm0, %v401_v15  ;;  %v403_v30 = vmax.f32 %v387_v20, %v395_v21  ;;  %v396_v31 = vmax.f32 %v1246_v24, %v1254_v26  ;;  %v1247_v32 = vld [vmem:[%s1470_s26 + $0x90] ss:$2 sm:$0xff]  ;;  %v1255_v33 = vld [vmem:[%s1470_s26 + $0x91] ss:$2 sm:$0xff]  ;;  %v389_v34 = vmax.f32 %v1231_v28, %v1239_v29  ;;  %v840_v2 = vld [vmem:[%s1758_s3] sm:$0xff] }
  0x18   : > { %v1232_v35 = vld [vmem:[%s1470_s26 + $0xa0] ss:$2 sm:$0xff]  ;;  %433 = vst.msk [vmem:[#allocation2 + $0x21] sm:$0xff] %vm409_vm0, %v402_v25  ;;  %v397_v36 = vmax.f32 %v1247_v32, %v1255_v33  ;;  %v1240_v37 = vld [vmem:[%s1470_s26 + $0xa1] ss:$2 sm:$0xff]  ;;  %v842_v7 = vld [vmem:[%s1758_s3 + $0x10] sm:$0xff] }
  0x19   : > { %v1248_v38 = vld [vmem:[%s1470_s26 + $0xb0] ss:$2 sm:$0xff]  ;;  %v1256_v39 = vld [vmem:[%s1470_s26 + $0xb1] ss:$2 sm:$0xff]  ;;  %434 = vst.msk [vmem:[#allocation2 + $0x31] sm:$0xff] %vm409_vm0, %v403_v30  ;;  %v404_v40 = vmax.f32 %v388_v27, %v396_v31  ;;  %v390_v41 = vmax.f32 %v1232_v35, %v1240_v37  ;;  %v841_v3 = vld [vmem:[%s1758_s3 + $0x8] sm:$0xff] }
  0x1a   : > { %v398_v42 = vmax.f32 %v1248_v38, %v1256_v39  ;;  %v1233_v43 = vld [vmem:[%s1470_s26 + $0xc0] ss:$2 sm:$0xff]  ;;  %v1241_v44 = vld [vmem:[%s1470_s26 + $0xc1] ss:$2 sm:$0xff]  ;;  %v1249_v45 = vld [vmem:[%s1470_s26 + $0xd0] ss:$2 sm:$0xff]  ;;  %v405_v46 = vmax.f32 %v389_v34, %v397_v36  ;;  %v1307_v4 = vpack.c.bf16 %v841_v3, %v840_v2 }
  0x1b   : > { %v1257_v47 = vld [vmem:[%s1470_s26 + $0xd1] ss:$2 sm:$0xff]  ;;  %v391_v48 = vmax.f32 %v1233_v43, %v1241_v44  ;;  %v1234_v49 = vld [vmem:[%s1470_s26 + $0xe0] ss:$2 sm:$0xff]  ;;  %v1242_v50 = vld [vmem:[%s1470_s26 + $0xe1] ss:$2 sm:$0xff] }
  0x1c   : > { %435 = vst.msk [vmem:[#allocation2 + $0x41] sm:$0xff] %vm409_vm0, %v404_v40  ;;  %v406_v51 = vmax.f32 %v390_v41, %v398_v42  ;;  %v399_v52 = vmax.f32 %v1249_v45, %v1257_v47  ;;  %v1250_v53 = vld [vmem:[%s1470_s26 + $0xf0] ss:$2 sm:$0xff]  ;;  %v1258_v54 = vld [vmem:[%s1470_s26 + $0xf1] ss:$2 sm:$0xff]  ;;  %v392_v55 = vmax.f32 %v1234_v49, %v1242_v50  ;;  %436 = vst.msk [vmem:[#allocation2 + $0x51] sm:$0xff] %vm409_vm0, %v405_v46  ;;  %1308 = vmatprep.subr.bf16.mxu0 %v1307_v4  ;;  %s1704_s26 = scalar_lea.vmem %s1759_s4, %s1271_s23 }
  0x1d   : > { %v400_v56 = vmax.f32 %v1250_v53, %v1258_v54  ;;  %1315 = vmatprep.subr.bf16.mxu1 %v1307_v4  ;;  %1310 = vmatpush3.bf16.msra.mxu0 %v1307_v4  ;;  %v843_v8 = vld [vmem:[%s1758_s3 + $0x18] sm:$0xff]  ;;  %v844_v10 = vld [vmem:[%s1758_s3 + $0x20] sm:$0xf]  ;;  %v496_v28 = vld [vmem:[#allocation2 + $0x90] sm:$0xff] }
  0x1e   : > { %v457_v57 = vld [vmem:[#allocation2 + $0x12] sm:$0xff]  ;;  %437 = vst.msk [vmem:[#allocation2 + $0x61] sm:$0xff] %vm409_vm0, %v406_v51  ;;  %v407_v59 = vmax.f32 %v391_v48, %v399_v52  ;;  %1318 = vmatpush3.bf16.msra.mxu1 %v1307_v4  ;;  %v1311_v9 = vpack.c.bf16 %v843_v8, %v842_v7  ;;  %v440_v45 = vld [vmem:[#allocation2] sm:$0xff] }
  0x1f   : > { %v449_v58 = vld [vmem:[#allocation2 + $0x11] sm:$0xff]  ;;  %555 = vrot.lane.b32.xlu1 %v457_v57, %s1379_s27  ;;  %v408_v60 = vmax.f32 %v392_v55, %v400_v56  ;;  %v1514_v61 = vld [vmem:[#allocation2 + $0x20] sm:$0xff] }
  0x20   : > { %523 = vrot.lane.b32.xlu0 %v449_v58, %s1380_s28  ;;  %v1516_v62 = vld [vmem:[#allocation2 + $0x10] sm:$0xff]  ;;  %438 = vst.msk [vmem:[#allocation2 + $0x71] sm:$0xff] %vm409_vm0, %v407_v59  ;;  %v450_v63 = vld [vmem:[#allocation2 + $0x21] sm:$0xff]  ;;  %1312 = vmatprep.subr.bf16.mxu0 %v1311_v9 }
  0x21   : > { %439 = vst.msk [vmem:[#allocation2 + $0x81] sm:$0xff] %vm409_vm0, %v408_v60  ;;  %v458_v0 = vld [vmem:[#allocation2 + $0x22] sm:$0xff]  ;;  %v451_v1 = vld [vmem:[#allocation2 + $0x31] sm:$0xff]  ;;  %1316 = vmatprep.subr.bf16.mxu1 %v1311_v9  ;;  %1314 = vmatpush3.bf16.msra.mxu0 %v1311_v9 }
  0x22   : > { %v1539_v5 = vld [vmem:[#allocation2 + $0x30] sm:$0xff]  ;;  %1319 = vmatpush3.bf16.msra.mxu1 %v1311_v9  ;;  %1293 = vmatprep.subr.msk.mxu0 %vm870_vm2, %v844_v10 }
  0x23   : > { %587 = vrot.lane.b32.xlu1 %v1514_v61, %s1381_s29  ;;  %v459_v6 = vld [vmem:[#allocation2 + $0x32] sm:$0xff]  ;;  %v1556_v11 = vld [vmem:[#allocation2 + $0x40] sm:$0xff]  ;;  %1317 = vmatprep.subr.msk.mxu1 %vm870_vm2, %v844_v10 }
  0x24   : > { %585 = vrot.lane.b32.xlu0 %v1516_v62, %s1381_s29  ;;  %v475_v12 = vld [vmem:[#allocation2 + $0x41] sm:$0xff]  ;;  %v453_v14 = vld [vmem:[#allocation2 + $0x51] sm:$0xff] }
  0x25   : > { %1294 = vmatpush3.msk.msra.mxu0 %vm870_vm2, %v844_v10  ;;  %v460_v13 = vld [vmem:[#allocation2 + $0x42] sm:$0xff]  ;;  %v1572_v15 = vld [vmem:[#allocation2 + $0x50] sm:$0xff] }
  0x26   : > { %1320 = vmatpush3.msk.msra.mxu1 %vm870_vm2, %v844_v10  ;;  %v461_v16 = vld [vmem:[#allocation2 + $0x52] sm:$0xff]  ;;  %v1580_v17 = vld [vmem:[#allocation2 + $0x60] sm:$0xff] }
  0x27   : > { %525 = vrot.lane.b32.xlu1 %v450_v63, %s1380_s28  ;;  %v477_v18 = vld [vmem:[#allocation2 + $0x61] sm:$0xff]  ;;  %v455_v20 = vld [vmem:[#allocation2 + $0x71] sm:$0xff] }
  0x28   : > { %617 = vrot.lane.b32.xlu0 %v449_v58, %s1382_s30  ;;  %v462_v19 = vld [vmem:[#allocation2 + $0x62] sm:$0xff]  ;;  %v1596_v21 = vld [vmem:[#allocation2 + $0x70] sm:$0xff] }
  0x29   : > { %v463_v22 = vld [vmem:[#allocation2 + $0x72] sm:$0xff]  ;;  %v471_v23 = vld [vmem:[#allocation2 + $0x80] sm:$0xff] }
  0x2a   : > { %v479_v24 = vld [vmem:[#allocation2 + $0x81] sm:$0xff]  ;;  %v504_v29 = vld [vmem:[#allocation2 + $0x91] sm:$0xff] }
  0x2b   : > { %649 = vrot.lane.b32.xlu1 %v457_v57, %s1383_s7  ;;  %v487_v25 = vld [vmem:[#allocation2 + $0x82] sm:$0xff]  ;;  %v512_v32 = vld [vmem:[#allocation2 + $0x92] sm:$0xff] }
  0x2c   : > { %619 = vrot.lane.b32.xlu0 %v450_v63, %s1382_s30 }
  0x2f   : > { %557 = vrot.lane.b32.xlu1 %v458_v0, %s1379_s27 }
  0x30   : > { %527 = vrot.lane.b32.xlu0 %v451_v1, %s1380_s28 }
  0x33   : > { %681 = vrot.lane.b32.xlu1 %v1514_v61, %s1384_s12 }
  0x34   : > { %651 = vrot.lane.b32.xlu0 %v458_v0, %s1383_s7 }
  0x37   : > { %589 = vrot.lane.b32.xlu1 %v1539_v5, %s1381_s29 }
  0x38   : > { %559 = vrot.lane.b32.xlu0 %v459_v6, %s1379_s27 }
  0x3b   : > { %713 = vrot.lane.b32.xlu1 %v450_v63, %s1385_s19 }
  0x3c   : > { %683 = vrot.lane.b32.xlu0 %v1539_v5, %s1384_s12 }
  0x3f   : > { %621 = vrot.lane.b32.xlu1 %v451_v1, %s1382_s30 }
  0x40   : > { %591 = vrot.lane.b32.xlu0 %v1556_v11, %s1381_s29 }
  0x43   : > { %745 = vrot.lane.b32.xlu1 %v458_v0, %s1386_s20 }
  0x44   : > { %715 = vrot.lane.b32.xlu0 %v451_v1, %s1385_s19 }
  0x47   : > { %623 = vrot.lane.b32.xlu1 %v475_v12, %s1382_s30 }
  0x48   : > { %529 = vrot.lane.b32.xlu0 %v475_v12, %s1380_s28 }
  0x4b   : > { %747 = vrot.lane.b32.xlu1 %v459_v6, %s1386_s20 }
  0x4c   : > { %653 = vrot.lane.b32.xlu0 %v459_v6, %s1383_s7 }
  0x4f   : > { %561 = vrot.lane.b32.xlu1 %v460_v13, %s1379_s27 }
  0x50   : > { %531 = vrot.lane.b32.xlu0 %v453_v14, %s1380_s28 }
  0x53   : > { %685 = vrot.lane.b32.xlu1 %v1556_v11, %s1384_s12 }
  0x54   : > { %655 = vrot.lane.b32.xlu0 %v460_v13, %s1383_s7 }
  0x57   : > { %593 = vrot.lane.b32.xlu1 %v1572_v15, %s1381_s29 }
  0x58   : > { %563 = vrot.lane.b32.xlu0 %v461_v16, %s1379_s27 }
  0x5b   : > { %717 = vrot.lane.b32.xlu1 %v475_v12, %s1385_s19 }
  0x5c   : > { %687 = vrot.lane.b32.xlu0 %v1572_v15, %s1384_s12 }
  0x5f   : > { %625 = vrot.lane.b32.xlu1 %v453_v14, %s1382_s30 }
  0x60   : > { %595 = vrot.lane.b32.xlu0 %v1580_v17, %s1381_s29 }
  0x63   : > { %749 = vrot.lane.b32.xlu1 %v460_v13, %s1386_s20 }
  0x64   : > { %719 = vrot.lane.b32.xlu0 %v453_v14, %s1385_s19 }
  0x67   : > { %627 = vrot.lane.b32.xlu1 %v477_v18, %s1382_s30 }
  0x68   : > { %533 = vrot.lane.b32.xlu0 %v477_v18, %s1380_s28 }
  0x6b   : > { %751 = vrot.lane.b32.xlu1 %v461_v16, %s1386_s20 }
  0x6c   : > { %657 = vrot.lane.b32.xlu0 %v461_v16, %s1383_s7 }
  0x6f   : > { %565 = vrot.lane.b32.xlu1 %v462_v19, %s1379_s27 }
  0x70   : > { %535 = vrot.lane.b32.xlu0 %v455_v20, %s1380_s28 }
  0x73   : > { %689 = vrot.lane.b32.xlu1 %v1580_v17, %s1384_s12 }
  0x74   : > { %659 = vrot.lane.b32.xlu0 %v462_v19, %s1383_s7 }
  0x77   : > { %597 = vrot.lane.b32.xlu1 %v1596_v21, %s1381_s29 }
  0x78   : > { %567 = vrot.lane.b32.xlu0 %v463_v22, %s1379_s27 }
  0x7b   : > { %721 = vrot.lane.b32.xlu1 %v477_v18, %s1385_s19 }
  0x7c   : > { %691 = vrot.lane.b32.xlu0 %v1596_v21, %s1384_s12 }
  0x7f   : > { %629 = vrot.lane.b32.xlu1 %v455_v20, %s1382_s30 }
  0x80   : > { %599 = vrot.lane.b32.xlu0 %v471_v23, %s1381_s29  ;;  %s315_s29 = scalar_lea.vmem %s1760_s5, %s1767_s21 }
  0x82   : > { %v554_v26 = vpop.permute.xlu1 %553 }
  0x83   : > { %753 = vrot.lane.b32.xlu1 %v462_v19, %s1386_s20  ;;  %v522_v27 = vpop.permute.xlu0 %521 }
  0x84   : > { %723 = vrot.lane.b32.xlu0 %v455_v20, %s1385_s19  ;;  %v769_v46 = vsel %vm409_vm0, %v440_v45, %v522_v27 }
  0x85   : > { %v778_v49 = vsel %vm777_vm3, %v769_v46, %v554_v26 }
  0x87   : > { %661 = vrot.lane.b32.xlu1 %v463_v22, %s1383_s7 }
  0x88   : > { %631 = vrot.lane.b32.xlu0 %v479_v24, %s1382_s30 }
  0x8b   : > { %663 = vrot.lane.b32.xlu1 %v487_v25, %s1383_s7 }
  0x8c   : > { %755 = vrot.lane.b32.xlu0 %v463_v22, %s1386_s20 }
  0x8f   : > { %695 = vrot.lane.b32.xlu1 %v496_v28, %s1384_s12 }
  0x90   : > { %693 = vrot.lane.b32.xlu0 %v471_v23, %s1384_s12 }
  0x91   : > { %v556_v30 = vpop.permute.xlu1 %555 }
  0x92   : > { %v524_v31 = vpop.permute.xlu0 %523 }
  0x93   : > { %727 = vrot.lane.b32.xlu1 %v504_v29, %s1385_s19  ;;  %v770_v56 = vsel %vm409_vm0, %v1516_v62, %v524_v31 }
  0x94   : > { %725 = vrot.lane.b32.xlu0 %v479_v24, %s1385_s19  ;;  %v779_v63 = vsel %vm777_vm3, %v770_v56, %v556_v30 }
  0x95   : > { %v588_v33 = vpop.permute.xlu1 %587 }
  0x96   : > { %v586_v34 = vpop.permute.xlu0 %585  ;;  %v788_v0 = vsel %vm786_vm4, %v779_v63, %v588_v33 }
  0x97   : > { %759 = vrot.lane.b32.xlu1 %v512_v32, %s1386_s20  ;;  %v787_v50 = vsel %vm786_vm4, %v778_v49, %v586_v34 }
  0x98   : > { %757 = vrot.lane.b32.xlu0 %v487_v25, %s1386_s20 }
  0x99   : > { %v526_v35 = vpop.permute.xlu1 %525 }
  0x9a   : > { %v618_v36 = vpop.permute.xlu0 %617  ;;  %v771_v22 = vsel %vm409_vm0, %v1514_v61, %v526_v35 }
  0x9b   : > { %v796_v53 = vsel %vm795_vm5, %v787_v50, %v618_v36 }
  0x9d   : > { %v650_v37 = vpop.permute.xlu1 %649 }
  0x9e   : > { %v620_v38 = vpop.permute.xlu0 %619  ;;  %v805_v54 = vsel %vm804_vm6, %v796_v53, %v650_v37 }
  0x9f   : > { %v797_v3 = vsel %vm795_vm5, %v788_v0, %v620_v38 }
  0xa1   : > { %v558_v39 = vpop.permute.xlu1 %557 }
  0xa2   : > { %v1618_v40 = vpop.permute.xlu0 %527  ;;  %v780_v23 = vsel %vm777_vm3, %v771_v22, %v558_v39 }
  0xa3   : > { %v772_v61 = vsel %vm409_vm0, %v1539_v5, %v1618_v40 }
  0xa5   : > { %v682_v41 = vpop.permute.xlu1 %681 }
  0xa6   : > { %v652_v42 = vpop.permute.xlu0 %651  ;;  %v814_v55 = vsel %vm813_vm7, %v805_v54, %v682_v41 }
  0xa7   : > { %v806_v4 = vsel %vm804_vm6, %v797_v3, %v652_v42 }
  0xa9   : > { %v590_v43 = vpop.permute.xlu1 %589 }
  0xaa   : > { %v560_v44 = vpop.permute.xlu0 %559  ;;  %v789_v24 = vsel %vm786_vm4, %v780_v23, %v590_v43 }
  0xab   : > { %v781_v34 = vsel %vm777_vm3, %v772_v61, %v560_v44 }
  0xad   : > { %v714_v47 = vpop.permute.xlu1 %713 }
  0xae   : > { %v684_v48 = vpop.permute.xlu0 %683  ;;  %v823_v57 = vsel %vm822_vm8, %v814_v55, %v714_v47 }
  0xaf   : > { %v815_v62 = vsel %vm813_vm7, %v806_v4, %v684_v48 }
  0xb1   : > { %v622_v51 = vpop.permute.xlu1 %621 }
  0xb2   : > { %v592_v52 = vpop.permute.xlu0 %591  ;;  %v798_v27 = vsel %vm795_vm5, %v789_v24, %v622_v51 }
  0xb3   : > { %v790_v35 = vsel %vm786_vm4, %v781_v34, %v592_v52 }
  0xb5   : > { %v746_v58 = vpop.permute.xlu1 %745 }
  0xb6   : > { %v716_v59 = vpop.permute.xlu0 %715  ;;  %v832_v60 = vsel %vm831_vm9, %v823_v57, %v746_v58 }
  0xb7   : > { %1295 = vmatprep.mubr.msk.f32.mxu0 %vm845_vm10, %v832_v60  ;;  %v824_v6 = vsel %vm822_vm8, %v815_v62, %v716_v59 }
  0xb9   : > { %v624_v1 = vpop.permute.xlu1 %623 }
  0xba   : > { %v530_v2 = vpop.permute.xlu0 %529  ;;  %v799_v38 = vsel %vm795_vm5, %v790_v35, %v624_v1 }
  0xbb   : > { %v773_v52 = vsel %vm409_vm0, %v1556_v11, %v530_v2 }
  0xbd   : > { %v748_v7 = vpop.permute.xlu1 %747 }
  0xbe   : > { %v654_v8 = vpop.permute.xlu0 %653  ;;  %v833_v9 = vsel %vm831_vm9, %v824_v6, %v748_v7 }
  0xbf   : > { %1296 = vmatmul.mubr.msk.f32.vlgmr.msra.gmra.mrb[0].mxu0 %vm845_vm10, %v833_v9  ;;  %v807_v28 = vsel %vm804_vm6, %v798_v27, %v654_v8 }
  0xc1   : > { %v562_v10 = vpop.permute.xlu1 %561 }
  0xc2   : > { %v532_v12 = vpop.permute.xlu0 %531  ;;  %v782_v53 = vsel %vm777_vm3, %v773_v52, %v562_v10 }
  0xc3   : > { %v774_v11 = vsel %vm409_vm0, %v1572_v15, %v532_v12 }
  0xc5   : > { %v686_v13 = vpop.permute.xlu1 %685 }
  0xc6   : > { %v656_v14 = vpop.permute.xlu0 %655  ;;  %v816_v29 = vsel %vm813_vm7, %v807_v28, %v686_v13 }
  0xc7   : > { %v808_v39 = vsel %vm804_vm6, %v799_v38, %v656_v14 }
  0xc9   : > { %v594_v16 = vpop.permute.xlu1 %593 }
  0xca   : > { %v564_v18 = vpop.permute.xlu0 %563  ;;  %v791_v54 = vsel %vm786_vm4, %v782_v53, %v594_v16 }
  0xcb   : > { %v783_v2 = vsel %vm777_vm3, %v774_v11, %v564_v18 }
  0xcd   : > { %v718_v19 = vpop.permute.xlu1 %717 }
  0xce   : > { %v688_v20 = vpop.permute.xlu0 %687  ;;  %v825_v30 = vsel %vm822_vm8, %v816_v29, %v718_v19 }
  0xcf   : > { %v817_v41 = vsel %vm813_vm7, %v808_v39, %v688_v20 }
  0xd1   : > { %v626_v25 = vpop.permute.xlu1 %625 }
  0xd2   : > { %v596_v26 = vpop.permute.xlu0 %595  ;;  %v800_v57 = vsel %vm795_vm5, %v791_v54, %v626_v25 }
  0xd3   : > { %v792_v3 = vsel %vm786_vm4, %v783_v2, %v596_v26 }
  0xd5   : > { %v750_v31 = vpop.permute.xlu1 %749 }
  0xd6   : > { %v720_v32 = vpop.permute.xlu0 %719  ;;  %v834_v33 = vsel %vm831_vm9, %v825_v30, %v750_v31 }
  0xd7   : > { %1298 = vmatprep.mubr.msk.f32.mxu0 %vm845_vm10, %v834_v33  ;;  %v826_v42 = vsel %vm822_vm8, %v817_v41, %v720_v32 }
  0xd9   : > { %v628_v36 = vpop.permute.xlu1 %627 }
  0xda   : > { %v534_v37 = vpop.permute.xlu0 %533  ;;  %v801_v6 = vsel %vm795_vm5, %v792_v3, %v628_v36 }
  0xdb   : > { %v775_v16 = vsel %vm409_vm0, %v1580_v17, %v534_v37 }
  0xdd   : > { %v752_v43 = vpop.permute.xlu1 %751 }
  0xde   : > { %v658_v45 = vpop.permute.xlu0 %657  ;;  %v835_v5 = vsel %vm831_vm9, %v826_v42, %v752_v43 }
  0xdf   : > { %1299 = vmatmul.mubr.msk.f32.gmra.mrb[2].mxu0 %vm845_vm10, %v835_v5  ;;  %v809_v58 = vsel %vm804_vm6, %v800_v57, %v658_v45 }
  0xe1   : > { %v566_v40 = vpop.permute.xlu1 %565 }
  0xe2   : > { %v536_v44 = vpop.permute.xlu0 %535  ;;  %v784_v19 = vsel %vm777_vm3, %v775_v16, %v566_v40 }
  0xe3   : > { %v776_v18 = vsel %vm409_vm0, %v1596_v21, %v536_v44 }
  0xe5   : > { %v690_v46 = vpop.permute.xlu1 %689 }
  0xe6   : > { %v660_v47 = vpop.permute.xlu0 %659  ;;  %v818_v59 = vsel %vm813_vm7, %v809_v58, %v690_v46 }
  0xe7   : > { %v810_v7 = vsel %vm804_vm6, %v801_v6, %v660_v47 }
  0xe9   : > { %v598_v48 = vpop.permute.xlu1 %597 }
  0xea   : > { %v568_v49 = vpop.permute.xlu0 %567  ;;  %v793_v22 = vsel %vm786_vm4, %v784_v19, %v598_v48 }
  0xeb   : > { %v785_v20 = vsel %vm777_vm3, %v776_v18, %v568_v49 }
  0xed   : > { %v722_v50 = vpop.permute.xlu1 %721 }
  0xee   : > { %v692_v51 = vpop.permute.xlu0 %691  ;;  %v827_v60 = vsel %vm822_vm8, %v818_v59, %v722_v50 }
  0xef   : > { %v819_v8 = vsel %vm813_vm7, %v810_v7, %v692_v51 }
  0xf1   : > { %v630_v55 = vpop.permute.xlu1 %629 }
  0xf2   : > { %v600_v56 = vpop.permute.xlu0 %599  ;;  %v802_v26 = vsel %vm795_vm5, %v793_v22, %v630_v55 }
  0xf3   : > { %v794_v23 = vsel %vm786_vm4, %v785_v20, %v600_v56 }
  0xf5   : > { %v754_v63 = vpop.permute.xlu1 %753 }
  0xf6   : > { %v724_v0 = vpop.permute.xlu0 %723  ;;  %v836_v1 = vsel %vm831_vm9, %v827_v60, %v754_v63 }
  0xf7   : > { %1301 = vmatprep.mubr.msk.f32.mxu1 %vm845_vm10, %v836_v1  ;;  %v828_v9 = vsel %vm822_vm8, %v819_v8, %v724_v0 }
  0xf9   : > { %v662_v4 = vpop.permute.xlu1 %661 }
  0xfa   : > { %v632_v62 = vpop.permute.xlu0 %631  ;;  %v811_v17 = vsel %vm804_vm6, %v802_v26, %v662_v4 }
  0xfb   : > { %v803_v27 = vsel %vm795_vm5, %v794_v23, %v632_v62 }
  0xfd   : > { %v664_v10 = vpop.permute.xlu1 %663 }
  0xfe   : > { %v756_v13 = vpop.permute.xlu0 %755  ;;  %v812_v28 = vsel %vm804_vm6, %v803_v27, %v664_v10 }
  0xff   : > { %v837_v15 = vsel %vm831_vm9, %v828_v9, %v756_v13 }
 0x100   : > { %1302 = vmatmul.mubr.msk.f32.vlgmr.msra.gmra.mrb[0].mxu1 %vm845_vm10, %v837_v15 }
 0x101   : > { %v696_v12 = vpop.permute.xlu1 %695 }
 0x102   : > { %v694_v14 = vpop.permute.xlu0 %693  ;;  %v821_v21 = vsel %vm813_vm7, %v812_v28, %v696_v12 }
 0x103   : > { %v820_v29 = vsel %vm813_vm7, %v811_v17, %v694_v14 }
 0x105   : > { %v728_v24 = vpop.permute.xlu1 %727 }
 0x106   : > { %v726_v25 = vpop.permute.xlu0 %725  ;;  %v830_v30 = vsel %vm822_vm8, %v821_v21, %v728_v24 }
 0x107   : > { %v829_v31 = vsel %vm822_vm8, %v820_v29, %v726_v25 }
 0x109   : > { %v760_v32 = vpop.permute.xlu1 %759 }
 0x10a   : > { %v758_v33 = vpop.permute.xlu0 %757  ;;  %v839_v61 = vsel %vm831_vm9, %v830_v30, %v760_v32 }
 0x10b   : > { %v838_v34 = vsel %vm831_vm9, %v829_v31, %v758_v33 }
 0x10c   : > { %1304 = vmatprep.mubr.msk.f32.mxu1 %vm845_vm10, %v838_v34 }
 0x10d   : > { %1305 = vmatmul.mubr.msk.f32.gmra.mrb[2].mxu1 %vm845_vm10, %v839_v61 }
 0x192   : > { %v1297_v35 = vpop.f32.mrb[0].mxu0 }
 0x193   : > { %980 = vst.msk [vmem:[%s1704_s26 + $0x8] sm:$0xff] %vm777_vm3, %v1297_v35  ;;  %v988_v36 = vsel %vm777_vm3, %v1297_v35, 0.0  ;;  %v1011_v37 = vmul.f32 %v1297_v35, %v1297_v35  ;;  %v940_v38 = vpop.f32.mrb[1].mxu0 }
 0x194   : > { %979 = vst.msk [vmem:[%s1704_s26] sm:$0xff] %vm777_vm3, %v940_v38  ;;  %v987_v39 = vsel %vm777_vm3, %v940_v38, 0.0  ;;  %v1010_v41 = vmul.f32 %v940_v38, %v940_v38 }
 0x195   : > { %v1019_v42 = vsel %vm777_vm3, %v1011_v37, 0.0  ;;  %v989_v43 = vadd.f32 %v988_v36, %v987_v39 }
 0x196   : > { %v1018_v45 = vsel %vm777_vm3, %v1010_v41, 0.0 }
 0x197   : > { %v1020_v5 = vadd.f32 %v1019_v42, %v1018_v45 }
 0x1b2   : > { %v1300_v40 = vpop.f32.mrb[2].mxu0 }
 0x1b3   : > { %982 = vst.msk [vmem:[%s1704_s26 + $0x18] sm:$0xff] %vm777_vm3, %v1300_v40  ;;  %v950_v44 = vpop.f32.mrb[3].mxu0  ;;  %v1013_v46 = vmul.f32 %v1300_v40, %v1300_v40  ;;  %v992_v50 = vsel %vm777_vm3, %v1300_v40, 0.0 }
 0x1b4   : > { %981 = vst.msk [vmem:[%s1704_s26 + $0x10] sm:$0xff] %vm777_vm3, %v950_v44  ;;  %v990_v47 = vsel %vm777_vm3, %v950_v44, 0.0  ;;  %v1012_v48 = vmul.f32 %v950_v44, %v950_v44 }
 0x1b5   : > { %v991_v49 = vadd.f32 %v990_v47, %v989_v43  ;;  %v1023_v54 = vsel %vm777_vm3, %v1013_v46, 0.0 }
 0x1b6   : > { %v1021_v51 = vsel %vm777_vm3, %v1012_v48, 0.0 }
 0x1b7   : > { %v993_v52 = vadd.f32 %v992_v50, %v991_v49  ;;  %v1022_v53 = vadd.f32 %v1021_v51, %v1020_v5 }
 0x1b9   : > { %v1024_v55 = vadd.f32 %v1023_v54, %v1022_v53 }
 0x1d3   : > { %v1303_v56 = vpop.f32.mrb[0].mxu1 }
 0x1d4   : > { %984 = vst.msk [vmem:[%s1704_s26 + $0x28] sm:$0xff] %vm777_vm3, %v1303_v56  ;;  %v960_v57 = vpop.f32.mrb[1].mxu1  ;;  %v1015_v58 = vmul.f32 %v1303_v56, %v1303_v56  ;;  %v996_v0 = vsel %vm777_vm3, %v1303_v56, 0.0 }
 0x1d5   : > { %983 = vst.msk [vmem:[%s1704_s26 + $0x20] sm:$0xff] %vm777_vm3, %v960_v57  ;;  %v994_v59 = vsel %vm777_vm3, %v960_v57, 0.0  ;;  %v1014_v60 = vmul.f32 %v960_v57, %v960_v57 }
 0x1d6   : > { %v995_v63 = vadd.f32 %v994_v59, %v993_v52  ;;  %v1027_v3 = vsel %vm777_vm3, %v1015_v58, 0.0 }
 0x1d7   : > { %v1025_v1 = vsel %vm777_vm3, %v1014_v60, 0.0 }
 0x1d8   : > { %v1026_v11 = vadd.f32 %v1025_v1, %v1024_v55  ;;  %v997_v2 = vadd.f32 %v996_v0, %v995_v63 }
 0x1da   : > { %v1028_v4 = vadd.f32 %v1027_v3, %v1026_v11 }
 0x1e0   : > { %v1306_v62 = vpop.f32.mrb[2].mxu1 }
 0x1e1   : > { %986 = vst.msk [vmem:[%s1704_s26 + $0x38] sm:$0xff] %vm777_vm3, %v1306_v62  ;;  %v970_v6 = vpop.f32.mrb[3].mxu1  ;;  %v1017_v7 = vmul.f32 %v1306_v62, %v1306_v62  ;;  %v1000_v13 = vsel %vm777_vm3, %v1306_v62, 0.0 }
 0x1e2   : > { %985 = vst.msk [vmem:[%s1704_s26 + $0x30] sm:$0xff] %vm777_vm3, %v970_v6  ;;  %v998_v8 = vsel %vm777_vm3, %v970_v6, 0.0  ;;  %v1016_v9 = vmul.f32 %v970_v6, %v970_v6 }
 0x1e3   : > { %v999_v10 = vadd.f32 %v998_v8, %v997_v2  ;;  %v1031_v16 = vsel %vm777_vm3, %v1017_v7, 0.0 }
 0x1e4   : > { %v1029_v15 = vsel %vm777_vm3, %v1016_v9, 0.0 }
 0x1e5   : > { %v1001_v12 = vadd.f32 %v1000_v13, %v999_v10  ;;  %v1030_v14 = vadd.f32 %v1029_v15, %v1028_v4 }
 0x1e7   : > { %v1002_v18 = vrot.slane %v1001_v12, 4  ;;  %v1032_v19 = vadd.f32 %v1031_v16, %v1030_v14 }
 0x1e9   : > { %v1003_v20 = vadd.f32 %v1002_v18, %v1001_v12  ;;  %v1033_v22 = vrot.slane %v1032_v19, 4 }
 0x1eb   : > { %v1004_v23 = vrot.slane %v1003_v20, 2  ;;  %v1034_v24 = vadd.f32 %v1033_v22, %v1032_v19 }
 0x1ed   : > { %v1005_v25 = vadd.f32 %v1004_v23, %v1003_v20  ;;  %v1035_v26 = vrot.slane %v1034_v24, 2 }
 0x1ef   : > { %v1006_v27 = vrot.slane %v1005_v25, 1  ;;  %v1036_v17 = vadd.f32 %v1035_v26, %v1034_v24 }
 0x1f1   : > { %v1007_v28 = vadd.f32 %v1006_v27, %v1005_v25  ;;  %v1037_v21 = vrot.slane %v1036_v17, 1 }
 0x1f3   : > { %1009 = vst.msk [vmem:[%s315_s29] sm:$0x1] %vm1008_vm11, %v1007_v28  ;;  %v1038_v29 = vadd.f32 %v1037_v21, %v1036_v17 }
 0x1f5   : > { %1039 = vst.msk [vmem:[%s321_s8] sm:$0x1] %vm1008_vm11, %v1038_v29 }
 0x1f6 PF: > { %s17_s1 = sadd.s32 1, %s1376_s1   ;;  %s1762_s21 = smov %s1372_s22 }
 0x1f7   : > { %p14_p5 = scmp.ge.s32.totalorder %s17_s1, 4   ;;  %s1763_s22 = smov %s1765_s2 }
 0x1f9   :  { %16 = sbr.rel (!%p14_p5) target bundleno = 2 (0x2), region = 126 }

// kernel: down_block.5
= control target key start
LH: loop header
LB: loop body
LE: loop exit
PB: predicated region body
PF: predicated region fallthrough
CT: control target
= control target key end

     0   :  { %s332_s12 = smov 0   ;;  %s363_s0 = inlined_call_operand.vmem [shape: f32[2,8,8,8], index: 0, kind: input, shape index: {}]   ;;  %s364_s1 = inlined_call_operand.vmem [shape: f32[1,8], index: 1, kind: input, shape index: {}]   ;;  %s365_s2 = inlined_call_operand.vmem [shape: f32[1,8], index: 2, kind: input, shape index: {}]   ;;  %s366_s3 = inlined_call_operand.vmem [shape: f32[2,8,8,8], index: 3, kind: output, shape index: {}]  }
   0x1 LB: > { %s281_s13 = sadd.s32 4294967295, %s310_s12   ;;  %p285_p0 = scmp.ge.s32.totalorder %s310_s12, 1  ;;  %s310_s12 = sphi %s332_s12, %s13_s12  }
   0x2   : > { %p137_p1 = scmp.lt.s32.totalorder %s310_s12, 3 }
   0x4   : > { %p138_p2 = pnand %p285_p0, %p137_p1 }
   0x5   : > { %p161_p3 = scmp.lt.s32.totalorder (!%p138_p2), %s281_s13, 1  ;;  %v290_v0 = vld [vmem:[%s364_s1] ss:$0 sm:$0xff] (!%p138_p2)  ;;  %vm217_vm0 = vcmask (!%p138_p2), 64512  }
   0x6   : > { %141 = sbr.rel (%p138_p2) target bundleno = 27 (0x1b), region = 32  ;;  %v291_v1 = vld [vmem:[%s365_s2] ss:$0 sm:$0xff] (!%p138_p2) }
   0xd   : > { %s368_s13 = smov (!%p161_p3, %s281_s13), 1 }
   0xe   : > { %s294_s14 = sshll.u32 %s368_s13, 6 }
   0xf   : > { %s165_s19 = scalar_lea.vmem %s363_s0, %s294_s14  ;;  %s170_s24 = scalar_lea.vmem %s366_s3, %s294_s14 }
  0x10   : > { %v171_v2 = vld [vmem:[%s165_s19] sm:$0xff]  ;;  %v172_v3 = vld [vmem:[%s165_s19 + $0x8] sm:$0xff]  ;;  %v173_v4 = vld [vmem:[%s165_s19 + $0x10] sm:$0xff] }
  0x11   : > { %v186_v5 = vmul.f32 %v290_v0, %v171_v2  ;;  %v187_v6 = vmul.f32 %v290_v0, %v172_v3  ;;  %v188_v7 = vmul.f32 %v290_v0, %v173_v4  ;;  %v174_v8 = vld [vmem:[%s165_s19 + $0x18] sm:$0xff]  ;;  %v175_v9 = vld [vmem:[%s165_s19 + $0x20] sm:$0xff]  ;;  %v176_v10 = vld [vmem:[%s165_s19 + $0x28] sm:$0xff] }
  0x12   : > { %v189_v11 = vmul.f32 %v290_v0, %v174_v8  ;;  %v190_v12 = vmul.f32 %v290_v0, %v175_v9  ;;  %v191_v13 = vmul.f32 %v290_v0, %v176_v10  ;;  %v177_v14 = vld [vmem:[%s165_s19 + $0x30] sm:$0xff]  ;;  %v178_v15 = vld [vmem:[%s165_s19 + $0x38] sm:$0xff] }
  0x13   : > { %v201_v16 = vadd.f32 %v291_v1, %v186_v5  ;;  %v202_v17 = vadd.f32 %v291_v1, %v187_v6  ;;  %v203_v18 = vadd.f32 %v291_v1, %v188_v7  ;;  %v192_v19 = vmul.f32 %v290_v0, %v177_v14 }
  0x14   : > { %v204_v20 = vadd.f32 %v291_v1, %v189_v11  ;;  %v205_v21 = vadd.f32 %v291_v1, %v190_v12  ;;  %v206_v22 = vadd.f32 %v291_v1, %v191_v13  ;;  %v193_v23 = vmul.f32 %v290_v0, %v178_v15 }
  0x15   : > { %v209_v24 = vmax.f32 %v201_v16, 0.0  ;;  %v210_v25 = vmax.f32 %v202_v17, 0.0  ;;  %v211_v26 = vmax.f32 %v203_v18, 0.0  ;;  %v207_v27 = vadd.f32 %v291_v1, %v192_v19 }
  0x16   : > { %v212_v28 = vmax.f32 %v204_v20, 0.0  ;;  %v213_v29 = vmax.f32 %v205_v21, 0.0  ;;  %v214_v30 = vmax.f32 %v206_v22, 0.0  ;;  %v208_v31 = vadd.f32 %v291_v1, %v193_v23 }
  0x17   : > { %218 = vst.msk [vmem:[%s170_s24] sm:$0xff] %vm217_vm0, %v209_v24  ;;  %219 = vst.msk [vmem:[%s170_s24 + $0x8] sm:$0xff] %vm217_vm0, %v210_v25  ;;  %v215_v32 = vmax.f32 %v207_v27, 0.0 }
  0x18   : > { %220 = vst.msk [vmem:[%s170_s24 + $0x10] sm:$0xff] %vm217_vm0, %v211_v26  ;;  %221 = vst.msk [vmem:[%s170_s24 + $0x18] sm:$0xff] %vm217_vm0, %v212_v28  ;;  %v216_v33 = vmax.f32 %v208_v31, 0.0 }
  0x19   : > { %222 = vst.msk [vmem:[%s170_s24 + $0x20] sm:$0xff] %vm217_vm0, %v213_v29  ;;  %223 = vst.msk [vmem:[%s170_s24 + $0x28] sm:$0xff] %vm217_vm0, %v214_v30 }
  0x1a   : > { %224 = vst.msk [vmem:[%s170_s24 + $0x30] sm:$0xff] %vm217_vm0, %v215_v32  ;;  %225 = vst.msk [vmem:[%s170_s24 + $0x38] sm:$0xff] %vm217_vm0, %v216_v33 }
  0x1b PF: > { %s13_s12 = sadd.s32 1, %s310_s12  }
  0x1c   : > { %p10_p4 = scmp.ge.s32.totalorder %s13_s12, 4  }
  0x1e   :  { %12 = sbr.rel (!%p10_p4) target bundleno = 1 (0x1), region = 62 }

// kernel: down_block.4
= control target key start
LH: loop header
LB: loop body
LE: loop exit
PB: predicated region body
PF: predicated region fallthrough
CT: control target
= control target key end

     0   :  { %s1360_s21 = smov 0   ;;  %s1362_s22 = smov 0   ;;  %s1680_s0 = inlined_call_operand.vmem [shape: f32[2,8,8,8], index: 0, kind: input, shape index: {}]   ;;  %s1681_s1 = inlined_call_operand.vmem [shape: f32[1,8], index: 1, kind: input, shape index: {}]   ;;  %s1682_s2 = inlined_call_operand.vmem [shape: f32[1,8], index: 2, kind: input, shape index: {}]   ;;  %s1683_s3 = inlined_call_operand.vmem [shape: f32[72,8], index: 3, kind: input, shape index: {}]   ;;  %s1684_s4 = inlined_call_operand.vmem [shape: f32[2,8,8,8], index: 4, kind: output, shape index: {0}]   ;;  %s1685_s5 = inlined_call_operand.vmem [shape: f32[2,1,8], index: 5, kind: output, shape index: {1}]   ;;  %s1686_s6 = inlined_call_operand.vmem [shape: f32[2,1,8], index: 6, kind: output, shape index: {2}]  }
   0x1   :  { %s1364_s23 = smov 0  }
   0x2 LB: > { %s29_s24 = sadd.s32 1, %s1310_s22  ;;  %p1167_p0 = scmp.ge.s32.totalorder %s1314_s23, 1  ;;  %s1314_s23 = sphi %s1364_s23, %s17_s23   ;;  %s1310_s22 = sphi %s1362_s22, %s1688_s22   ;;  %s1306_s21 = sphi %s1360_s21, %s1687_s21  }
   0x3   : > { %p31_p1 = scmp.ge.s32.totalorder %s29_s24, 2  ;;  %p244_p2 = scmp.lt.s32.totalorder %s1314_s23, 3 }
   0x5   : > { %s1690_s24 = smov (%p31_p1, %s29_s24), 0  ;;  %p245_p3 = pnand %p1167_p0, %p244_p2 }
   0x6   : > { %vm368_vm0 = vcmask (!%p245_p3), 64512   ;;  %vm370_vm1 = vcmask (!%p245_p3), 58368   ;;  %v1316_v0 = vmov (!%p245_p3), 0.0   ;;  %p293_p4 = scmp.lt.s32.totalorder (!%p245_p3), %s1306_s21, 1  ;;  %v1172_v1 = vld [vmem:[%s1681_s1] ss:$0 sm:$0xff] (!%p245_p3) }
   0x7   : > { %248 = sbr.rel (%p245_p3) target bundleno = 503 (0x1f7), region = 36  ;;  %369 = vst.msk [vmem:[#allocation2] sm:$0xff] (!%p245_p3), %vm368_vm0, %v1316_v0  ;;  %372 = vst.msk [vmem:[#allocation2 + $0x10] sm:$0xff] (!%p245_p3), %vm368_vm0, %v1316_v0  ;;  %v1173_v2 = vld [vmem:[%s1682_s2] ss:$0 sm:$0xff] (!%p245_p3)  ;;  %s1317_s9 = smov (!%p245_p3), 16  }
   0x8   : > { %371 = vst.msk [vmem:[#allocation2 + $0x8] sm:$0x3] (!%p245_p3), %vm370_vm1, %v1316_v0  ;;  %373 = vst.msk [vmem:[#allocation2 + $0x18] sm:$0x3] (!%p245_p3), %vm370_vm1, %v1316_v0  ;;  %s1318_s10 = smov (!%p245_p3), 8   ;;  %s1319_s11 = smov (!%p245_p3), 24  }
   0x9   : > { %374 = vst.msk [vmem:[#allocation2 + $0x20] sm:$0xff] (!%p245_p3), %vm368_vm0, %v1316_v0  ;;  %376 = vst.msk [vmem:[#allocation2 + $0x30] sm:$0xff] (!%p245_p3), %vm368_vm0, %v1316_v0  ;;  %s1320_s12 = smov (!%p245_p3), 32   ;;  %v799_v42 = vld [vmem:[%s1683_s3] sm:$0xff] (!%p245_p3)  ;;  %v800_v43 = vld [vmem:[%s1683_s3 + $0x8] sm:$0xff] (!%p245_p3)  ;;  %s1321_s17 = smov (!%p245_p3), 40  }
   0xa   : > { %375 = vst.msk [vmem:[#allocation2 + $0x28] sm:$0x3] (!%p245_p3), %vm370_vm1, %v1316_v0  ;;  %377 = vst.msk [vmem:[#allocation2 + $0x38] sm:$0x3] (!%p245_p3), %vm370_vm1, %v1316_v0  ;;  %v1233_v44 = vpack.c.bf16 (!%p245_p3), %v800_v43, %v799_v42  ;;  %v801_v47 = vld [vmem:[%s1683_s3 + $0x10] sm:$0xff] (!%p245_p3)  ;;  %v802_v48 = vld [vmem:[%s1683_s3 + $0x18] sm:$0xff] (!%p245_p3) }
   0xb   : > { %378 = vst.msk [vmem:[#allocation2 + $0x40] sm:$0xff] (!%p245_p3), %vm368_vm0, %v1316_v0  ;;  %380 = vst.msk [vmem:[#allocation2 + $0x50] sm:$0xff] (!%p245_p3), %vm368_vm0, %v1316_v0  ;;  %v1237_v49 = vpack.c.bf16 (!%p245_p3), %v802_v48, %v801_v47  ;;  %v803_v50 = vld [vmem:[%s1683_s3 + $0x20] sm:$0xff] (!%p245_p3)  ;;  %v804_v51 = vld [vmem:[%s1683_s3 + $0x28] sm:$0xff] (!%p245_p3)  ;;  %s1322_s7 = smov (!%p245_p3), 48   ;;  %s1323_s19 = smov (!%p245_p3), 56  }
   0xc   : > { %379 = vst.msk [vmem:[#allocation2 + $0x48] sm:$0x3] (!%p245_p3), %vm370_vm1, %v1316_v0  ;;  %381 = vst.msk [vmem:[#allocation2 + $0x58] sm:$0x3] (!%p245_p3), %vm370_vm1, %v1316_v0  ;;  %1234 = vmatprep.subr.bf16.mxu0 (!%p245_p3), %v1233_v44  ;;  %1249 = vmatprep.subr.bf16.mxu1 (!%p245_p3), %v1233_v44  ;;  %v1241_v52 = vpack.c.bf16 (!%p245_p3), %v804_v51, %v803_v50  ;;  %v805_v55 = vld [vmem:[%s1683_s3 + $0x30] sm:$0xff] (!%p245_p3)  ;;  %v806_v56 = vld [vmem:[%s1683_s3 + $0x38] sm:$0xff] (!%p245_p3) }
   0xd   : > { %382 = vst.msk [vmem:[#allocation2 + $0x60] sm:$0xff] (!%p245_p3), %vm368_vm0, %v1316_v0  ;;  %384 = vst.msk [vmem:[#allocation2 + $0x70] sm:$0xff] (!%p245_p3), %vm368_vm0, %v1316_v0  ;;  %1236 = vmatpush3.bf16.msra.mxu0 (!%p245_p3), %v1233_v44  ;;  %1254 = vmatpush3.bf16.msra.mxu1 (!%p245_p3), %v1233_v44  ;;  %v1245_v57 = vpack.c.bf16 (!%p245_p3), %v806_v56, %v805_v55  ;;  %v807_v58 = vld [vmem:[%s1683_s3 + $0x40] sm:$0xff] (!%p245_p3)  ;;  %s1324_s20 = smov (!%p245_p3), 64   ;;  %vm736_vm2 = vcmask (!%p245_p3), 130048   ;;  %vm745_vm3 = vcmask (!%p245_p3), 195584  }
   0xe   : > { %383 = vst.msk [vmem:[#allocation2 + $0x68] sm:$0x3] %vm370_vm1, %v1316_v0  ;;  %385 = vst.msk [vmem:[#allocation2 + $0x78] sm:$0x3] %vm370_vm1, %v1316_v0  ;;  %s1692_s21 = smov (!%p293_p4, %s1306_s21), 1  ;;  %1238 = vmatprep.subr.bf16.mxu0 %v1237_v49  ;;  %1250 = vmatprep.subr.bf16.mxu1 %v1237_v49  ;;  %vm754_vm4 = vcmask 261120  }
   0xf   : > { %386 = vst.msk [vmem:[#allocation2 + $0x80] sm:$0xff] %vm368_vm0, %v1316_v0  ;;  %388 = vst.msk [vmem:[#allocation2 + $0x90] sm:$0xff] %vm368_vm0, %v1316_v0  ;;  %s1184_s25 = sshll.u32 %s1692_s21, 6  ;;  %v415_v6 = vld [vmem:[#allocation2 + $0x2] sm:$0xff]  ;;  %vm763_vm5 = vcmask 326656   ;;  %vm772_vm6 = vcmask 392192   ;;  %s321_s28 = scalar_lea.vmem %s1686_s6, %s1692_s21 }
  0x10   : > { %387 = vst.msk [vmem:[#allocation2 + $0x88] sm:$0x3] %vm370_vm1, %v1316_v0  ;;  %389 = vst.msk [vmem:[#allocation2 + $0x98] sm:$0x3] %vm370_vm1, %v1316_v0  ;;  %s297_s30 = scalar_lea.vmem %s1680_s0, %s1184_s25  ;;  %v407_v7 = vld [vmem:[#allocation2 + $0x1] sm:$0xff]  ;;  %512 = vrot.lane.b32.xlu1 %v415_v6, %s1317_s9  ;;  %vm781_vm7 = vcmask 457728  }
  0x11   : > { %v322_v3 = vld [vmem:[%s297_s30] sm:$0xff]  ;;  %v323_v4 = vld [vmem:[%s297_s30 + $0x8] sm:$0xff]  ;;  %v324_v5 = vld [vmem:[%s297_s30 + $0x10] sm:$0xff]  ;;  %480 = vrot.lane.b32.xlu0 %v407_v7, %s1318_s10  ;;  %1240 = vmatpush3.bf16.msra.mxu0 %v1237_v49  ;;  %vm790_vm8 = vcmask 523264   ;;  %vm808_vm9 = vcmask 588800   ;;  %vm967_vm10 = vcmask 57344  }
  0x12   : > { %v337_v8 = vmul.f32 %v1172_v1, %v322_v3  ;;  %v338_v9 = vmul.f32 %v1172_v1, %v323_v4  ;;  %v339_v10 = vmul.f32 %v1172_v1, %v324_v5  ;;  %v325_v11 = vld [vmem:[%s297_s30 + $0x18] sm:$0xff]  ;;  %v326_v13 = vld [vmem:[%s297_s30 + $0x20] sm:$0xff]  ;;  %v327_v14 = vld [vmem:[%s297_s30 + $0x28] sm:$0xff]  ;;  %1255 = vmatpush3.bf16.msra.mxu1 %v1237_v49  ;;  %1242 = vmatprep.subr.bf16.mxu0 %v1241_v52 }
  0x13   : > { %v340_v12 = vmul.f32 %v1172_v1, %v325_v11  ;;  %v341_v18 = vmul.f32 %v1172_v1, %v326_v13  ;;  %v328_v19 = vld [vmem:[%s297_s30 + $0x30] sm:$0xff]  ;;  %v329_v20 = vld [vmem:[%s297_s30 + $0x38] sm:$0xff]  ;;  %v342_v22 = vmul.f32 %v1172_v1, %v327_v14  ;;  %1251 = vmatprep.subr.bf16.mxu1 %v1241_v52 }
  0x14   : > { %v352_v15 = vadd.f32 %v1173_v2, %v337_v8  ;;  %v353_v16 = vadd.f32 %v1173_v2, %v338_v9  ;;  %v354_v17 = vadd.f32 %v1173_v2, %v339_v10  ;;  %v343_v23 = vmul.f32 %v1172_v1, %v328_v19 }
  0x15   : > { %v355_v21 = vadd.f32 %v1173_v2, %v340_v12  ;;  %v344_v24 = vmul.f32 %v1172_v1, %v329_v20  ;;  %v356_v28 = vadd.f32 %v1173_v2, %v341_v18  ;;  %v357_v30 = vadd.f32 %v1173_v2, %v342_v22  ;;  %1244 = vmatpush3.bf16.msra.mxu0 %v1241_v52 }
  0x16   : > { %v360_v25 = vmax.f32 %v352_v15, 0.0  ;;  %v361_v26 = vmax.f32 %v353_v16, 0.0  ;;  %v362_v27 = vmax.f32 %v354_v17, 0.0  ;;  %v358_v31 = vadd.f32 %v1173_v2, %v343_v23  ;;  %1256 = vmatpush3.bf16.msra.mxu1 %v1241_v52  ;;  %1246 = vmatprep.subr.bf16.mxu0 %v1245_v57  ;;  %v455_v12 = vld [vmem:[#allocation2 + $0x90] sm:$0xff] }
  0x17   : > { %v363_v29 = vmax.f32 %v355_v21, 0.0  ;;  %v359_v32 = vadd.f32 %v1173_v2, %v344_v24  ;;  %v364_v33 = vmax.f32 %v356_v28, 0.0  ;;  %v365_v34 = vmax.f32 %v357_v30, 0.0  ;;  %1252 = vmatprep.subr.bf16.mxu1 %v1245_v57  ;;  %v463_v13 = vld [vmem:[#allocation2 + $0x91] sm:$0xff] }
  0x18   : > { %391 = vst.msk [vmem:[#allocation2 + $0x11] sm:$0xff] %vm368_vm0, %v360_v25  ;;  %392 = vst.msk [vmem:[#allocation2 + $0x21] sm:$0xff] %vm368_vm0, %v361_v26  ;;  %v366_v35 = vmax.f32 %v358_v31, 0.0  ;;  %v471_v16 = vld [vmem:[#allocation2 + $0x92] sm:$0xff] }
  0x19   : > { %393 = vst.msk [vmem:[#allocation2 + $0x31] sm:$0xff] %vm368_vm0, %v362_v27  ;;  %394 = vst.msk [vmem:[#allocation2 + $0x41] sm:$0xff] %vm368_vm0, %v363_v29  ;;  %v367_v36 = vmax.f32 %v359_v32, 0.0  ;;  %1248 = vmatpush3.bf16.msra.mxu0 %v1245_v57  ;;  %v399_v29 = vld [vmem:[#allocation2] sm:$0xff] }
  0x1a   : > { %395 = vst.msk [vmem:[#allocation2 + $0x51] sm:$0xff] %vm368_vm0, %v364_v33  ;;  %396 = vst.msk [vmem:[#allocation2 + $0x61] sm:$0xff] %vm368_vm0, %v365_v34  ;;  %1257 = vmatpush3.bf16.msra.mxu1 %v1245_v57  ;;  %1219 = vmatprep.subr.mxu0 %v807_v58 }
  0x1b   : > { %397 = vst.msk [vmem:[#allocation2 + $0x71] sm:$0xff] %vm368_vm0, %v366_v35  ;;  %398 = vst.msk [vmem:[#allocation2 + $0x81] sm:$0xff] %vm368_vm0, %v367_v36  ;;  %1253 = vmatprep.subr.mxu1 %v807_v58 }
  0x1d   : > { %1220 = vmatpush3.msra.mxu0 %v807_v58 }
  0x1e   : > { %1258 = vmatpush3.msra.mxu1 %v807_v58 }
  0x1f   : > { %v416_v37 = vld [vmem:[#allocation2 + $0x12] sm:$0xff]  ;;  %v1428_v39 = vld [vmem:[#allocation2 + $0x20] sm:$0xff] }
  0x20   : > { %v408_v38 = vld [vmem:[#allocation2 + $0x11] sm:$0xff]  ;;  %514 = vrot.lane.b32.xlu1 %v416_v37, %s1317_s9  ;;  %v409_v41 = vld [vmem:[#allocation2 + $0x21] sm:$0xff] }
  0x21   : > { %482 = vrot.lane.b32.xlu0 %v408_v38, %s1318_s10  ;;  %v1430_v40 = vld [vmem:[#allocation2 + $0x10] sm:$0xff]  ;;  %v417_v45 = vld [vmem:[#allocation2 + $0x22] sm:$0xff] }
  0x22   : > { %v410_v46 = vld [vmem:[#allocation2 + $0x31] sm:$0xff]  ;;  %v1480_v59 = vld [vmem:[#allocation2 + $0x40] sm:$0xff] }
  0x23   : > { %v1463_v53 = vld [vmem:[#allocation2 + $0x30] sm:$0xff]  ;;  %v434_v60 = vld [vmem:[#allocation2 + $0x41] sm:$0xff] }
  0x24   : > { %546 = vrot.lane.b32.xlu1 %v1428_v39, %s1319_s11  ;;  %v418_v54 = vld [vmem:[#allocation2 + $0x32] sm:$0xff]  ;;  %v419_v61 = vld [vmem:[#allocation2 + $0x42] sm:$0xff] }
  0x25   : > { %544 = vrot.lane.b32.xlu0 %v1430_v40, %s1319_s11  ;;  %v412_v62 = vld [vmem:[#allocation2 + $0x51] sm:$0xff]  ;;  %v1504_v1 = vld [vmem:[#allocation2 + $0x60] sm:$0xff] }
  0x26   : > { %v1496_v63 = vld [vmem:[#allocation2 + $0x50] sm:$0xff]  ;;  %v436_v2 = vld [vmem:[#allocation2 + $0x61] sm:$0xff] }
  0x27   : > { %v420_v0 = vld [vmem:[#allocation2 + $0x52] sm:$0xff]  ;;  %v421_v3 = vld [vmem:[#allocation2 + $0x62] sm:$0xff] }
  0x28   : > { %484 = vrot.lane.b32.xlu1 %v409_v41, %s1318_s10  ;;  %v414_v4 = vld [vmem:[#allocation2 + $0x71] sm:$0xff]  ;;  %v430_v7 = vld [vmem:[#allocation2 + $0x80] sm:$0xff] }
  0x29   : > { %576 = vrot.lane.b32.xlu0 %v408_v38, %s1320_s12  ;;  %v1520_v5 = vld [vmem:[#allocation2 + $0x70] sm:$0xff]  ;;  %v438_v8 = vld [vmem:[#allocation2 + $0x81] sm:$0xff] }
  0x2a   : > { %v422_v6 = vld [vmem:[#allocation2 + $0x72] sm:$0xff]  ;;  %v446_v9 = vld [vmem:[#allocation2 + $0x82] sm:$0xff] }
  0x2c   : > { %608 = vrot.lane.b32.xlu1 %v416_v37, %s1321_s17 }
  0x2d   : > { %578 = vrot.lane.b32.xlu0 %v409_v41, %s1320_s12 }
  0x30   : > { %516 = vrot.lane.b32.xlu1 %v417_v45, %s1317_s9 }
  0x31   : > { %486 = vrot.lane.b32.xlu0 %v410_v46, %s1318_s10 }
  0x34   : > { %640 = vrot.lane.b32.xlu1 %v1428_v39, %s1322_s7 }
  0x35   : > { %610 = vrot.lane.b32.xlu0 %v417_v45, %s1321_s17 }
  0x38   : > { %548 = vrot.lane.b32.xlu1 %v1463_v53, %s1319_s11 }
  0x39   : > { %518 = vrot.lane.b32.xlu0 %v418_v54, %s1317_s9 }
  0x3c   : > { %672 = vrot.lane.b32.xlu1 %v409_v41, %s1323_s19 }
  0x3d   : > { %642 = vrot.lane.b32.xlu0 %v1463_v53, %s1322_s7 }
  0x40   : > { %580 = vrot.lane.b32.xlu1 %v410_v46, %s1320_s12 }
  0x41   : > { %550 = vrot.lane.b32.xlu0 %v1480_v59, %s1319_s11 }
  0x44   : > { %704 = vrot.lane.b32.xlu1 %v417_v45, %s1324_s20 }
  0x45   : > { %674 = vrot.lane.b32.xlu0 %v410_v46, %s1323_s19 }
  0x48   : > { %582 = vrot.lane.b32.xlu1 %v434_v60, %s1320_s12 }
  0x49   : > { %488 = vrot.lane.b32.xlu0 %v434_v60, %s1318_s10 }
  0x4c   : > { %706 = vrot.lane.b32.xlu1 %v418_v54, %s1324_s20 }
  0x4d   : > { %612 = vrot.lane.b32.xlu0 %v418_v54, %s1321_s17 }
  0x50   : > { %520 = vrot.lane.b32.xlu1 %v419_v61, %s1317_s9 }
  0x51   : > { %490 = vrot.lane.b32.xlu0 %v412_v62, %s1318_s10 }
  0x54   : > { %644 = vrot.lane.b32.xlu1 %v1480_v59, %s1322_s7 }
  0x55   : > { %614 = vrot.lane.b32.xlu0 %v419_v61, %s1321_s17 }
  0x58   : > { %552 = vrot.lane.b32.xlu1 %v1496_v63, %s1319_s11 }
  0x59   : > { %522 = vrot.lane.b32.xlu0 %v420_v0, %s1317_s9 }
  0x5c   : > { %676 = vrot.lane.b32.xlu1 %v434_v60, %s1323_s19 }
  0x5d   : > { %646 = vrot.lane.b32.xlu0 %v1496_v63, %s1322_s7 }
  0x60   : > { %584 = vrot.lane.b32.xlu1 %v412_v62, %s1320_s12 }
  0x61   : > { %554 = vrot.lane.b32.xlu0 %v1504_v1, %s1319_s11 }
  0x64   : > { %708 = vrot.lane.b32.xlu1 %v419_v61, %s1324_s20 }
  0x65   : > { %678 = vrot.lane.b32.xlu0 %v412_v62, %s1323_s19 }
  0x68   : > { %586 = vrot.lane.b32.xlu1 %v436_v2, %s1320_s12 }
  0x69   : > { %492 = vrot.lane.b32.xlu0 %v436_v2, %s1318_s10 }
  0x6c   : > { %710 = vrot.lane.b32.xlu1 %v420_v0, %s1324_s20 }
  0x6d   : > { %616 = vrot.lane.b32.xlu0 %v420_v0, %s1321_s17 }
  0x70   : > { %524 = vrot.lane.b32.xlu1 %v421_v3, %s1317_s9 }
  0x71   : > { %494 = vrot.lane.b32.xlu0 %v414_v4, %s1318_s10 }
  0x74   : > { %648 = vrot.lane.b32.xlu1 %v1504_v1, %s1322_s7 }
  0x75   : > { %618 = vrot.lane.b32.xlu0 %v421_v3, %s1321_s17 }
  0x78   : > { %556 = vrot.lane.b32.xlu1 %v1520_v5, %s1319_s11 }
  0x79   : > { %526 = vrot.lane.b32.xlu0 %v422_v6, %s1317_s9 }
  0x7c   : > { %680 = vrot.lane.b32.xlu1 %v436_v2, %s1323_s19 }
  0x7d   : > { %650 = vrot.lane.b32.xlu0 %v1520_v5, %s1322_s7 }
  0x80   : > { %588 = vrot.lane.b32.xlu1 %v414_v4, %s1320_s12 }
  0x81   : > { %558 = vrot.lane.b32.xlu0 %v430_v7, %s1319_s11  ;;  %s1629_s11 = scalar_lea.vmem %s1684_s4, %s1184_s25 }
  0x82   : > { %v513_v10 = vpop.permute.xlu1 %512 }
  0x83   : > { %v481_v11 = vpop.permute.xlu0 %480 }
  0x84   : > { %712 = vrot.lane.b32.xlu1 %v421_v3, %s1324_s20  ;;  %v728_v30 = vsel %vm368_vm0, %v399_v29, %v481_v11 }
  0x85   : > { %682 = vrot.lane.b32.xlu0 %v414_v4, %s1323_s19  ;;  %v737_v33 = vsel %vm736_vm2, %v728_v30, %v513_v10 }
  0x88   : > { %620 = vrot.lane.b32.xlu1 %v422_v6, %s1321_s17 }
  0x89   : > { %590 = vrot.lane.b32.xlu0 %v438_v8, %s1320_s12 }
  0x8c   : > { %622 = vrot.lane.b32.xlu1 %v446_v9, %s1321_s17  ;;  %s315_s17 = scalar_lea.vmem %s1685_s5, %s1692_s21 }
  0x8d   : > { %714 = vrot.lane.b32.xlu0 %v422_v6, %s1324_s20 }
  0x90   : > { %654 = vrot.lane.b32.xlu1 %v455_v12, %s1322_s7 }
  0x91   : > { %652 = vrot.lane.b32.xlu0 %v430_v7, %s1322_s7 }
  0x92   : > { %v515_v14 = vpop.permute.xlu1 %514 }
  0x93   : > { %v483_v15 = vpop.permute.xlu0 %482 }
  0x94   : > { %686 = vrot.lane.b32.xlu1 %v463_v13, %s1323_s19  ;;  %v729_v42 = vsel %vm368_vm0, %v1430_v40, %v483_v15 }
  0x95   : > { %684 = vrot.lane.b32.xlu0 %v438_v8, %s1323_s19  ;;  %v738_v47 = vsel %vm736_vm2, %v729_v42, %v515_v14 }
  0x96   : > { %v547_v17 = vpop.permute.xlu1 %546 }
  0x97   : > { %v545_v18 = vpop.permute.xlu0 %544  ;;  %v747_v48 = vsel %vm745_vm3, %v738_v47, %v547_v17 }
  0x98   : > { %718 = vrot.lane.b32.xlu1 %v471_v16, %s1324_s20  ;;  %v746_v34 = vsel %vm745_vm3, %v737_v33, %v545_v18 }
  0x99   : > { %716 = vrot.lane.b32.xlu0 %v446_v9, %s1324_s20 }
  0x9a   : > { %v485_v19 = vpop.permute.xlu1 %484 }
  0x9b   : > { %v577_v20 = vpop.permute.xlu0 %576  ;;  %v730_v6 = vsel %vm368_vm0, %v1428_v39, %v485_v19 }
  0x9c   : > { %v755_v37 = vsel %vm754_vm4, %v746_v34, %v577_v20 }
  0x9e   : > { %v609_v21 = vpop.permute.xlu1 %608 }
  0x9f   : > { %v579_v22 = vpop.permute.xlu0 %578  ;;  %v764_v38 = vsel %vm763_vm5, %v755_v37, %v609_v21 }
  0xa0   : > { %v756_v51 = vsel %vm754_vm4, %v747_v48, %v579_v22 }
  0xa2   : > { %v517_v23 = vpop.permute.xlu1 %516 }
  0xa3   : > { %v1542_v24 = vpop.permute.xlu0 %486  ;;  %v739_v7 = vsel %vm736_vm2, %v730_v6, %v517_v23 }
  0xa4   : > { %v731_v39 = vsel %vm368_vm0, %v1463_v53, %v1542_v24 }
  0xa6   : > { %v641_v25 = vpop.permute.xlu1 %640 }
  0xa7   : > { %v611_v26 = vpop.permute.xlu0 %610  ;;  %v773_v41 = vsel %vm772_vm6, %v764_v38, %v641_v25 }
  0xa8   : > { %v765_v52 = vsel %vm763_vm5, %v756_v51, %v611_v26 }
  0xaa   : > { %v549_v27 = vpop.permute.xlu1 %548 }
  0xab   : > { %v519_v28 = vpop.permute.xlu0 %518  ;;  %v748_v8 = vsel %vm745_vm3, %v739_v7, %v549_v27 }
  0xac   : > { %v740_v18 = vsel %vm736_vm2, %v731_v39, %v519_v28 }
  0xae   : > { %v673_v31 = vpop.permute.xlu1 %672 }
  0xaf   : > { %v643_v32 = vpop.permute.xlu0 %642  ;;  %v782_v43 = vsel %vm781_vm7, %v773_v41, %v673_v31 }
  0xb0   : > { %v774_v40 = vsel %vm772_vm6, %v765_v52, %v643_v32 }
  0xb2   : > { %v581_v35 = vpop.permute.xlu1 %580 }
  0xb3   : > { %v551_v36 = vpop.permute.xlu0 %550  ;;  %v757_v11 = vsel %vm754_vm4, %v748_v8, %v581_v35 }
  0xb4   : > { %v749_v19 = vsel %vm745_vm3, %v740_v18, %v551_v36 }
  0xb6   : > { %v705_v44 = vpop.permute.xlu1 %704 }
  0xb7   : > { %v675_v45 = vpop.permute.xlu0 %674  ;;  %v791_v46 = vsel %vm790_vm8, %v782_v43, %v705_v44 }
  0xb8   : > { %1221 = vmatprep.mubr.msk.f32.mxu0 %vm808_vm9, %v791_v46  ;;  %v783_v54 = vsel %vm781_vm7, %v774_v40, %v675_v45 }
  0xba   : > { %v583_v49 = vpop.permute.xlu1 %582 }
  0xbb   : > { %v489_v50 = vpop.permute.xlu0 %488  ;;  %v758_v22 = vsel %vm754_vm4, %v749_v19, %v583_v49 }
  0xbc   : > { %v732_v36 = vsel %vm368_vm0, %v1480_v59, %v489_v50 }
  0xbe   : > { %v707_v55 = vpop.permute.xlu1 %706 }
  0xbf   : > { %v613_v56 = vpop.permute.xlu0 %612  ;;  %v792_v57 = vsel %vm790_vm8, %v783_v54, %v707_v55 }
  0xc0   : > { %1222 = vmatmul.mubr.msk.f32.vlgmr.msra.gmra.mrb[0].mxu0 %vm808_vm9, %v792_v57  ;;  %v766_v12 = vsel %vm763_vm5, %v757_v11, %v613_v56 }
  0xc2   : > { %v521_v58 = vpop.permute.xlu1 %520 }
  0xc3   : > { %v491_v60 = vpop.permute.xlu0 %490  ;;  %v741_v37 = vsel %vm736_vm2, %v732_v36, %v521_v58 }
  0xc4   : > { %v733_v59 = vsel %vm368_vm0, %v1496_v63, %v491_v60 }
  0xc6   : > { %v645_v61 = vpop.permute.xlu1 %644 }
  0xc7   : > { %v615_v62 = vpop.permute.xlu0 %614  ;;  %v775_v13 = vsel %vm772_vm6, %v766_v12, %v645_v61 }
  0xc8   : > { %v767_v23 = vsel %vm763_vm5, %v758_v22, %v615_v62 }
  0xca   : > { %v553_v0 = vpop.permute.xlu1 %552 }
  0xcb   : > { %v523_v2 = vpop.permute.xlu0 %522  ;;  %v750_v38 = vsel %vm745_vm3, %v741_v37, %v553_v0 }
  0xcc   : > { %v742_v50 = vsel %vm736_vm2, %v733_v59, %v523_v2 }
  0xce   : > { %v677_v3 = vpop.permute.xlu1 %676 }
  0xcf   : > { %v647_v4 = vpop.permute.xlu0 %646  ;;  %v784_v14 = vsel %vm781_vm7, %v775_v13, %v677_v3 }
  0xd0   : > { %v776_v25 = vsel %vm772_vm6, %v767_v23, %v647_v4 }
  0xd2   : > { %v585_v9 = vpop.permute.xlu1 %584 }
  0xd3   : > { %v555_v10 = vpop.permute.xlu0 %554  ;;  %v759_v43 = vsel %vm754_vm4, %v750_v38, %v585_v9 }
  0xd4   : > { %v751_v51 = vsel %vm745_vm3, %v742_v50, %v555_v10 }
  0xd6   : > { %v709_v15 = vpop.permute.xlu1 %708 }
  0xd7   : > { %v679_v16 = vpop.permute.xlu0 %678  ;;  %v793_v17 = vsel %vm790_vm8, %v784_v14, %v709_v15 }
  0xd8   : > { %1224 = vmatprep.mubr.msk.f32.mxu0 %vm808_vm9, %v793_v17  ;;  %v785_v26 = vsel %vm781_vm7, %v776_v25, %v679_v16 }
  0xda   : > { %v587_v20 = vpop.permute.xlu1 %586 }
  0xdb   : > { %v493_v21 = vpop.permute.xlu0 %492  ;;  %v760_v54 = vsel %vm754_vm4, %v751_v51, %v587_v20 }
  0xdc   : > { %v734_v0 = vsel %vm368_vm0, %v1504_v1, %v493_v21 }
  0xde   : > { %v711_v27 = vpop.permute.xlu1 %710 }
  0xdf   : > { %v617_v29 = vpop.permute.xlu0 %616  ;;  %v794_v53 = vsel %vm790_vm8, %v785_v26, %v711_v27 }
  0xe0   : > { %1225 = vmatmul.mubr.msk.f32.gmra.mrb[2].mxu0 %vm808_vm9, %v794_v53  ;;  %v768_v44 = vsel %vm763_vm5, %v759_v43, %v617_v29 }
  0xe2   : > { %v525_v24 = vpop.permute.xlu1 %524 }
  0xe3   : > { %v495_v28 = vpop.permute.xlu0 %494  ;;  %v743_v3 = vsel %vm736_vm2, %v734_v0, %v525_v24 }
  0xe4   : > { %v735_v2 = vsel %vm368_vm0, %v1520_v5, %v495_v28 }
  0xe6   : > { %v649_v30 = vpop.permute.xlu1 %648 }
  0xe7   : > { %v619_v31 = vpop.permute.xlu0 %618  ;;  %v777_v45 = vsel %vm772_vm6, %v768_v44, %v649_v30 }
  0xe8   : > { %v769_v55 = vsel %vm763_vm5, %v760_v54, %v619_v31 }
  0xea   : > { %v557_v32 = vpop.permute.xlu1 %556 }
  0xeb   : > { %v527_v33 = vpop.permute.xlu0 %526  ;;  %v752_v6 = vsel %vm745_vm3, %v743_v3, %v557_v32 }
  0xec   : > { %v744_v4 = vsel %vm736_vm2, %v735_v2, %v527_v33 }
  0xee   : > { %v681_v34 = vpop.permute.xlu1 %680 }
  0xef   : > { %v651_v35 = vpop.permute.xlu0 %650  ;;  %v786_v46 = vsel %vm781_vm7, %v777_v45, %v681_v34 }
  0xf0   : > { %v778_v56 = vsel %vm772_vm6, %v769_v55, %v651_v35 }
  0xf2   : > { %v589_v41 = vpop.permute.xlu1 %588 }
  0xf3   : > { %v559_v42 = vpop.permute.xlu0 %558  ;;  %v761_v10 = vsel %vm754_vm4, %v752_v6, %v589_v41 }
  0xf4   : > { %v753_v7 = vsel %vm745_vm3, %v744_v4, %v559_v42 }
  0xf6   : > { %v713_v47 = vpop.permute.xlu1 %712 }
  0xf7   : > { %v683_v48 = vpop.permute.xlu0 %682  ;;  %v795_v49 = vsel %vm790_vm8, %v786_v46, %v713_v47 }
  0xf8   : > { %1227 = vmatprep.mubr.msk.f32.mxu1 %vm808_vm9, %v795_v49  ;;  %v787_v57 = vsel %vm781_vm7, %v778_v56, %v683_v48 }
  0xfa   : > { %v621_v52 = vpop.permute.xlu1 %620 }
  0xfb   : > { %v591_v40 = vpop.permute.xlu0 %590  ;;  %v770_v1 = vsel %vm763_vm5, %v761_v10, %v621_v52 }
  0xfc   : > { %v762_v11 = vsel %vm754_vm4, %v753_v7, %v591_v40 }
  0xfe   : > { %v623_v58 = vpop.permute.xlu1 %622 }
  0xff   : > { %v715_v61 = vpop.permute.xlu0 %714  ;;  %v771_v12 = vsel %vm763_vm5, %v762_v11, %v623_v58 }
 0x100   : > { %v796_v63 = vsel %vm790_vm8, %v787_v57, %v715_v61 }
 0x101   : > { %1228 = vmatmul.mubr.msk.f32.vlgmr.msra.gmra.mrb[0].mxu1 %vm808_vm9, %v796_v63 }
 0x102   : > { %v655_v60 = vpop.permute.xlu1 %654 }
 0x103   : > { %v653_v62 = vpop.permute.xlu0 %652  ;;  %v780_v5 = vsel %vm772_vm6, %v771_v12, %v655_v60 }
 0x104   : > { %v779_v13 = vsel %vm772_vm6, %v770_v1, %v653_v62 }
 0x106   : > { %v687_v8 = vpop.permute.xlu1 %686 }
 0x107   : > { %v685_v9 = vpop.permute.xlu0 %684  ;;  %v789_v14 = vsel %vm781_vm7, %v780_v5, %v687_v8 }
 0x108   : > { %v788_v15 = vsel %vm781_vm7, %v779_v13, %v685_v9 }
 0x10a   : > { %v719_v16 = vpop.permute.xlu1 %718 }
 0x10b   : > { %v717_v17 = vpop.permute.xlu0 %716  ;;  %v798_v39 = vsel %vm790_vm8, %v789_v14, %v719_v16 }
 0x10c   : > { %v797_v18 = vsel %vm790_vm8, %v788_v15, %v717_v17 }
 0x10d   : > { %1230 = vmatprep.mubr.msk.f32.mxu1 %vm808_vm9, %v797_v18 }
 0x10e   : > { %1231 = vmatmul.mubr.msk.f32.gmra.mrb[2].mxu1 %vm808_vm9, %v798_v39 }
 0x193   : > { %v1223_v19 = vpop.f32.mrb[0].mxu0 }
 0x194   : > { %939 = vst.msk [vmem:[%s1629_s11 + $0x8] sm:$0xff] %vm368_vm0, %v1223_v19  ;;  %v947_v20 = vsel %vm368_vm0, %v1223_v19, 0.0  ;;  %v970_v21 = vmul.f32 %v1223_v19, %v1223_v19  ;;  %v899_v22 = vpop.f32.mrb[1].mxu0 }
 0x195   : > { %938 = vst.msk [vmem:[%s1629_s11] sm:$0xff] %vm368_vm0, %v899_v22  ;;  %v946_v23 = vsel %vm368_vm0, %v899_v22, 0.0  ;;  %v969_v25 = vmul.f32 %v899_v22, %v899_v22 }
 0x196   : > { %v978_v26 = vsel %vm368_vm0, %v970_v21, 0.0  ;;  %v948_v27 = vadd.f32 %v947_v20, %v946_v23 }
 0x197   : > { %v977_v29 = vsel %vm368_vm0, %v969_v25, 0.0 }
 0x198   : > { %v979_v53 = vadd.f32 %v978_v26, %v977_v29 }
 0x1b3   : > { %v1226_v24 = vpop.f32.mrb[2].mxu0 }
 0x1b4   : > { %941 = vst.msk [vmem:[%s1629_s11 + $0x18] sm:$0xff] %vm368_vm0, %v1226_v24  ;;  %v909_v28 = vpop.f32.mrb[3].mxu0  ;;  %v972_v30 = vmul.f32 %v1226_v24, %v1226_v24  ;;  %v951_v34 = vsel %vm368_vm0, %v1226_v24, 0.0 }
 0x1b5   : > { %940 = vst.msk [vmem:[%s1629_s11 + $0x10] sm:$0xff] %vm368_vm0, %v909_v28  ;;  %v949_v31 = vsel %vm368_vm0, %v909_v28, 0.0  ;;  %v971_v32 = vmul.f32 %v909_v28, %v909_v28 }
 0x1b6   : > { %v950_v33 = vadd.f32 %v949_v31, %v948_v27  ;;  %v982_v38 = vsel %vm368_vm0, %v972_v30, 0.0 }
 0x1b7   : > { %v980_v35 = vsel %vm368_vm0, %v971_v32, 0.0 }
 0x1b8   : > { %v952_v36 = vadd.f32 %v951_v34, %v950_v33  ;;  %v981_v37 = vadd.f32 %v980_v35, %v979_v53 }
 0x1ba   : > { %v983_v41 = vadd.f32 %v982_v38, %v981_v37 }
 0x1d4   : > { %v1229_v42 = vpop.f32.mrb[0].mxu1 }
 0x1d5   : > { %943 = vst.msk [vmem:[%s1629_s11 + $0x28] sm:$0xff] %vm368_vm0, %v1229_v42  ;;  %v919_v43 = vpop.f32.mrb[1].mxu1  ;;  %v974_v44 = vmul.f32 %v1229_v42, %v1229_v42  ;;  %v955_v48 = vsel %vm368_vm0, %v1229_v42, 0.0 }
 0x1d6   : > { %942 = vst.msk [vmem:[%s1629_s11 + $0x20] sm:$0xff] %vm368_vm0, %v919_v43  ;;  %v953_v45 = vsel %vm368_vm0, %v919_v43, 0.0  ;;  %v973_v46 = vmul.f32 %v919_v43, %v919_v43 }
 0x1d7   : > { %v954_v47 = vadd.f32 %v953_v45, %v952_v36  ;;  %v986_v51 = vsel %vm368_vm0, %v974_v44, 0.0 }
 0x1d8   : > { %v984_v49 = vsel %vm368_vm0, %v973_v46, 0.0 }
 0x1d9   : > { %v985_v59 = vadd.f32 %v984_v49, %v983_v41  ;;  %v956_v50 = vadd.f32 %v955_v48, %v954_v47 }
 0x1db   : > { %v987_v52 = vadd.f32 %v986_v51, %v985_v59 }
 0x1e1   : > { %v1232_v40 = vpop.f32.mrb[2].mxu1 }
 0x1e2   : > { %945 = vst.msk [vmem:[%s1629_s11 + $0x38] sm:$0xff] %vm368_vm0, %v1232_v40  ;;  %v929_v54 = vpop.f32.mrb[3].mxu1  ;;  %v976_v55 = vmul.f32 %v1232_v40, %v1232_v40  ;;  %v959_v61 = vsel %vm368_vm0, %v1232_v40, 0.0 }
 0x1e3   : > { %944 = vst.msk [vmem:[%s1629_s11 + $0x30] sm:$0xff] %vm368_vm0, %v929_v54  ;;  %v957_v56 = vsel %vm368_vm0, %v929_v54, 0.0  ;;  %v975_v57 = vmul.f32 %v929_v54, %v929_v54 }
 0x1e4   : > { %v958_v58 = vadd.f32 %v957_v56, %v956_v50  ;;  %v990_v0 = vsel %vm368_vm0, %v976_v55, 0.0 }
 0x1e5   : > { %v988_v63 = vsel %vm368_vm0, %v975_v57, 0.0 }
 0x1e6   : > { %v960_v60 = vadd.f32 %v959_v61, %v958_v58  ;;  %v989_v62 = vadd.f32 %v988_v63, %v987_v52 }
 0x1e8   : > { %v961_v2 = vrot.slane %v960_v60, 4  ;;  %v991_v3 = vadd.f32 %v990_v0, %v989_v62 }
 0x1ea   : > { %v962_v4 = vadd.f32 %v961_v2, %v960_v60  ;;  %v992_v6 = vrot.slane %v991_v3, 4 }
 0x1ec   : > { %v963_v7 = vrot.slane %v962_v4, 2  ;;  %v993_v8 = vadd.f32 %v992_v6, %v991_v3 }
 0x1ee   : > { %v964_v9 = vadd.f32 %v963_v7, %v962_v4  ;;  %v994_v10 = vrot.slane %v993_v8, 2 }
 0x1f0   : > { %v965_v11 = vrot.slane %v964_v9, 1  ;;  %v995_v1 = vadd.f32 %v994_v10, %v993_v8 }
 0x1f2   : > { %v966_v12 = vadd.f32 %v965_v11, %v964_v9  ;;  %v996_v5 = vrot.slane %v995_v1, 1 }
 0x1f4   : > { %968 = vst.msk [vmem:[%s315_s17] sm:$0x1] %vm967_vm10, %v966_v12  ;;  %v997_v13 = vadd.f32 %v996_v5, %v995_v1 }
 0x1f6   : > { %998 = vst.msk [vmem:[%s321_s28] sm:$0x1] %vm967_vm10, %v997_v13 }
 0x1f7 PF: > { %s17_s23 = sadd.s32 1, %s1314_s23   ;;  %s1687_s21 = smov %s1310_s22 }
 0x1f8   : > { %p14_p5 = scmp.ge.s32.totalorder %s17_s23, 4   ;;  %s1688_s22 = smov %s1690_s24 }
 0x1fa   :  { %16 = sbr.rel (!%p14_p5) target bundleno = 2 (0x2), region = 95 }

</bundles_post_ra>
